<compile_context>
chip_gen: v5e
topology: v5e:2x2
jax: 0.10.0
libtpu: 0.0.40
codegen_flags: <defaults>
</compile_context>

<pallas_src>
import functools

import jax
import jax.numpy as jnp
from jax.experimental import pallas as pl
from jax.experimental.pallas import tpu as pltpu


def _round_up(a: int, b: int) -> int:
    return ((a + b - 1) // b) * b


def _cdiv(a: int, b: int) -> int:
    return (a + b - 1) // b


# --------------------------------------------------------------------------
# Kernels
# --------------------------------------------------------------------------
def _ffn_residual_acc_kernel(x_ref, w1_ref, b1_ref, w2_ref, b2_ref, o_ref,
                             acc_ref, *, bf16_elementwise):
    """o = Linear2(GELU(Linear1(x))) + x, with d_ff tiled over grid axis 1."""
    k = pl.program_id(1)

    @pl.when(k == 0)
    def _init():
        acc_ref[...] = jnp.zeros_like(acc_ref)

    x_bf = x_ref[...]                                   # bf16 (cast in wrapper)

    # First matmul on the MXU, f32 accumulation.
    h = jnp.dot(x_bf, w1_ref[...], preferred_element_type=jnp.float32)
    if bf16_elementwise:
        # v6e/v7x: bf16 VPU/EUP -> halve elementwise traffic and the (tm, tf)
        # intermediate footprint; the second MXU operand is bf16 anyway.
        h = jax.nn.gelu(h.astype(jnp.bfloat16) + b1_ref[...].astype(jnp.bfloat16))
    else:
        # v5e: no bf16 VPU/EUP -> keep bias + GELU in f32, cast once for MXU.
        h = jax.nn.gelu(h + b1_ref[...]).astype(jnp.bfloat16)
    # TODO(synk): jax.nn.gelu default is the tanh approximation; PyTorch
    # nn.GELU() default is exact erf, so a PyTorch FFN reference differs
    # slightly (the in-file JAX reference matches the kernel).

    # Accumulate the second matmul over the d_ff (k) axis in f32.
    acc_ref[...] += jnp.dot(h, w2_ref[...], preferred_element_type=jnp.float32)

    @pl.when(k == pl.num_programs(1) - 1)
    def _finalize():
        # b2 and the residual are added exactly once, in f32.
        y = acc_ref[...] + b2_ref[...] + x_bf.astype(jnp.float32)
        o_ref[...] = y.astype(o_ref.dtype)


def _ffn_residual_single_kernel(x_ref, w1_ref, b1_ref, w2_ref, b2_ref, o_ref,
                                *, bf16_elementwise):
    """Single-k variant (tf == F): no accumulator scratch, no init/finalize."""
    x_bf = x_ref[...]
    h = jnp.dot(x_bf, w1_ref[...], preferred_element_type=jnp.float32)
    if bf16_elementwise:
        h = jax.nn.gelu(h.astype(jnp.bfloat16) + b1_ref[...].astype(jnp.bfloat16))
    else:
        h = jax.nn.gelu(h + b1_ref[...]).astype(jnp.bfloat16)
    y = jnp.dot(h, w2_ref[...], preferred_element_type=jnp.float32)
    y = y + b2_ref[...] + x_bf.astype(jnp.float32)
    o_ref[...] = y.astype(o_ref.dtype)


# --------------------------------------------------------------------------
# Per-generation tile / VMEM selection
# --------------------------------------------------------------------------
def _device_kind() -> str:
    try:
        return jax.devices()[0].device_kind.lower()
    except Exception:  # pragma: no cover - no devices during tracing tests
        return ""


def _vmem_capacity_bytes() -> int:
    try:
        cap = pltpu.get_tpu_info().vmem_capacity_bytes
        if cap:
            return int(cap)
    except Exception:
        pass
    return 64 << 20  # conservative default: v7x per-TC VMEM


def _supports_bf16_elementwise() -> bool:
    kind = _device_kind()
    return ("v6" in kind) or ("v7" in kind)


def _prefer_split_rows() -> bool:
    # v7x has 2 TensorCores/chip: keep grid[0] >= 2 so the "parallel" row
    # axis feeds both cores.
    return "v7" in _device_kind()


def _tile_vmem_bytes(tm, tf, D, out_itemsize, multi_k, bf16_elementwise):
    h_item = 2 if bf16_elementwise else 4
    b = 0
    b += 2 * tm * D * 2                 # x tiles (bf16, double-buffered)
    b += 2 * tm * D * out_itemsize      # out tiles (double-buffered)
    b += 2 * D * tf * 2                 # w1 tiles (bf16, double-buffered)
    b += 2 * tf * D * 2                 # w2 tiles (bf16, double-buffered)
    b += 2 * (tf + D) * 4               # bias tiles (f32)
    b += tm * tf * 4 + tm * tf * h_item  # f32 matmul result + bf16/f32 h copy
    if multi_k:
        b += tm * D * 4                 # f32 accumulator scratch
    return b


def _select_tiles(M, D, F, out_itemsize, vmem_cap, bf16_elementwise):
    budget = int(vmem_cap * 0.85)       # ~15% headroom for compiler scratch

    if F <= 2048:
        tf_cands = [F]
    else:
        tf_cands = [c for c in (2048, 1536, 1024, 768, 512, 384, 256, 128)
                    if c <= F and F % c == 0] or [F]

    max_tm = _round_up(M, 128)
    tm_cands = [t for t in (1024, 768, 512, 384, 256, 128) if t <= max_tm] or [max_tm]
    if _prefer_split_rows() and M > 128:
        split = [t for t in tm_cands if _cdiv(M, t) >= 2]
        if split:
            tm_cands = split

    # Weight bytes per row tile are ~2*D*F*2 regardless of tf, so arithmetic
    # intensity scales with tm: prefer the largest tm that fits, then the
    # largest tf (fewer k steps / accumulator passes).
    for tm in tm_cands:
        for tf in tf_cands:
            if _tile_vmem_bytes(tm, tf, D, out_itemsize, tf < F,
                                bf16_elementwise) <= budget:
                return tm, tf
    return tm_cands[-1], tf_cands[-1]   # smallest combination as a fallback


# --------------------------------------------------------------------------
# Wrapper
# --------------------------------------------------------------------------
def residual_ffn_pallas(x, w1, b1, w2, b2, *, tm=None, tf=None,
                        bf16_elementwise=None):
    """Fused Residual(FeedForward): returns fn(x) + x for x of shape (B, S, D)."""
    B, S, D = x.shape
    F = w1.shape[1]
    assert w1.shape == (D, F) and w2.shape == (F, D)
    assert b1.shape[-1] == F and b2.shape[-1] == D
    assert D % 128 == 0 and F % 128 == 0, "lane dims must be 128-multiples"

    if bf16_elementwise is None:
        bf16_elementwise = _supports_bf16_elementwise()

    M = B * S
    out_itemsize = jnp.dtype(x.dtype).itemsize
    vmem_cap = _vmem_capacity_bytes()

    auto_tm, auto_tf = _select_tiles(M, D, F, out_itemsize, vmem_cap,
                                     bf16_elementwise)
    if tm is None:
        tm = auto_tm
    if tf is None:
        tf = auto_tf
    tm = _round_up(min(tm, _round_up(M, 128)), 128)
    if F % tf != 0:
        tf = F

    num_row_tiles = _cdiv(M, tm)        # partial edge block is masked on store
    num_k = F // tf
    multi_k = num_k > 1

    # x cast to bf16 once here (halves x DMA/VMEM, removes per-k VPU cast).
    # NOTE: the residual add is therefore sourced from the bf16-rounded x.
    x2 = x.reshape(M, D).astype(jnp.bfloat16)
    w1b = w1.astype(jnp.bfloat16)
    w2b = w2.astype(jnp.bfloat16)
    b1f = b1.reshape(1, F).astype(jnp.float32)
    b2f = b2.reshape(1, D).astype(jnp.float32)

    vmem_bytes = _tile_vmem_bytes(tm, tf, D, out_itemsize, multi_k,
                                  bf16_elementwise)
    vmem_limit = int(min(max(int(vmem_bytes * 1.2), 8 << 20), vmem_cap))

    cost = pl.CostEstimate(
        flops=4 * M * D * F,                       # two matmuls
        transcendentals=M * F,                     # GELU
        bytes_accessed=(M * D * 2                  # x (bf16) read
                        + M * D * out_itemsize     # output write
                        + num_row_tiles * 2 * D * F * 2  # weights re-streamed / row tile
                        + (F + D) * 4),            # biases
    )

    if multi_k:
        kernel = functools.partial(_ffn_residual_acc_kernel,
                                   bf16_elementwise=bf16_elementwise)
        grid = (num_row_tiles, num_k)
        in_specs = [
            pl.BlockSpec((tm, D), lambda i, k: (i, 0)),   # x rows, resident over k
            pl.BlockSpec((D, tf), lambda i, k: (0, k)),   # w1 column tile
            pl.BlockSpec((1, tf), lambda i, k: (0, k)),   # b1 tile
            pl.BlockSpec((tf, D), lambda i, k: (k, 0)),   # w2 row tile
            pl.BlockSpec((1, D), lambda i, k: (0, 0)),    # b2 (always resident)
        ]
        out_spec = pl.BlockSpec((tm, D), lambda i, k: (i, 0))
        scratch = [pltpu.VMEM((tm, D), jnp.float32)]
        dims = ("parallel", "arbitrary")
    else:
        kernel = functools.partial(_ffn_residual_single_kernel,
                                   bf16_elementwise=bf16_elementwise)
        grid = (num_row_tiles,)
        in_specs = [
            pl.BlockSpec((tm, D), lambda i: (i, 0)),      # x rows
            pl.BlockSpec((D, F), lambda i: (0, 0)),       # w1, VMEM-resident
            pl.BlockSpec((1, F), lambda i: (0, 0)),       # b1, VMEM-resident
            pl.BlockSpec((F, D), lambda i: (0, 0)),       # w2, VMEM-resident
            pl.BlockSpec((1, D), lambda i: (0, 0)),       # b2, VMEM-resident
        ]
        out_spec = pl.BlockSpec((tm, D), lambda i: (i, 0))
        scratch = []
        dims = ("parallel",)

    out = pl.pallas_call(
        kernel,
        out_shape=jax.ShapeDtypeStruct((M, D), x.dtype),
        grid=grid,
        in_specs=in_specs,
        out_specs=out_spec,
        scratch_shapes=scratch,
        compiler_params=pltpu.CompilerParams(
            dimension_semantics=dims,
            vmem_limit_bytes=vmem_limit,
        ),
        cost_estimate=cost,
    )(x2, w1b, b1f, w2b, b2f)

    return out.reshape(B, S, D)


# --------------------------------------------------------------------------
# Plain-JAX reference mirroring the kernel math
# --------------------------------------------------------------------------
def residual_ffn_reference(x, w1, b1, w2, b2, *, bf16_elementwise=False):
    B, S, D = x.shape
    x2 = x.reshape(B * S, D).astype(jnp.bfloat16)
    h = jnp.dot(x2, w1.astype(jnp.bfloat16), preferred_element_type=jnp.float32)
    if bf16_elementwise:
        h = jax.nn.gelu(h.astype(jnp.bfloat16)
                        + b1.reshape(1, -1).astype(jnp.bfloat16))
    else:
        h = jax.nn.gelu(h + b1.reshape(1, -1).astype(jnp.float32))
        h = h.astype(jnp.bfloat16)
    y = jnp.dot(h, w2.astype(jnp.bfloat16), preferred_element_type=jnp.float32)
    y = y + b2.reshape(1, -1).astype(jnp.float32) + x2.astype(jnp.float32)
    return y.astype(x.dtype).reshape(B, S, D)


if __name__ == "__main__":
    # Small but MXU/vreg-aligned shapes (128-multiple lane dims).
    batch, seq, hidden, d_ff = 2, 128, 128, 256

    key = jax.random.PRNGKey(0)
    kx, kw1, kb1, kw2, kb2 = jax.random.split(key, 5)

    x = jax.random.normal(kx, (batch, seq, hidden), dtype=jnp.float32)
    w1 = jax.random.normal(kw1, (hidden, d_ff), dtype=jnp.float32) * 0.05
    b1 = jax.random.normal(kb1, (d_ff,), dtype=jnp.float32) * 0.1
    w2 = jax.random.normal(kw2, (d_ff, hidden), dtype=jnp.float32) * 0.05
    b2 = jax.random.normal(kb2, (hidden,), dtype=jnp.float32) * 0.1

    use_bf16_elem = _supports_bf16_elementwise()
    ref = residual_ffn_reference(x, w1, b1, w2, b2,
                                 bf16_elementwise=use_bf16_elem)

    # 1) Auto tiling: tf == F here -> single-k, no-accumulator variant with
    #    VMEM-resident weights.
    out = residual_ffn_pallas(x, w1, b1, w2, b2)
    out = jax.block_until_ready(out)
    assert out.shape == x.shape and out.dtype == x.dtype
    assert jnp.allclose(out, ref, atol=2e-2, rtol=2e-2), "auto-tiling mismatch"

    # 2) Forced tf < F -> exercises the d_ff-tiled accumulator path
    #    (grid = (row_tiles, k_tiles), f32 VMEM accumulator).
    out2 = residual_ffn_pallas(x, w1, b1, w2, b2, tm=128, tf=128)
    out2 = jax.block_until_ready(out2)
    assert out2.shape == x.shape and out2.dtype == x.dtype
    assert jnp.allclose(out2, ref, atol=2e-2, rtol=2e-2), "acc-path mismatch"

    print("KERNEL_OK")
</pallas_src>

<mosaic_0001>
module attributes {stable_mosaic.version = 11 : i64} {
  func.func @_ffn_residual_single_kernel(%arg0: i32, %arg1: memref<256x128xbf16, #tpu.memory_space<vmem>>, %arg2: memref<128x256xbf16, #tpu.memory_space<vmem>>, %arg3: memref<1x256xf32, #tpu.memory_space<vmem>>, %arg4: memref<256x128xbf16, #tpu.memory_space<vmem>>, %arg5: memref<1x128xf32, #tpu.memory_space<vmem>>, %arg6: memref<256x128xf32, #tpu.memory_space<vmem>>) attributes {dimension_semantics = [#tpu.dimension_semantics<parallel>], iteration_bounds = array<i64: 1>, scalar_prefetch = 0 : i64, scratch_operands = 0 : i64, tpu.core_type = #tpu.core_type<tc>, window_params = [{transform_indices = @transform_0, window_bounds = array<i64: 256, 128>}, {pipeline_mode = #tpu.pipeline_mode<synchronous>, transform_indices = @transform_1, window_bounds = array<i64: 128, 256>}, {pipeline_mode = #tpu.pipeline_mode<synchronous>, transform_indices = @transform_2, window_bounds = array<i64: 1, 256>}, {pipeline_mode = #tpu.pipeline_mode<synchronous>, transform_indices = @transform_3, window_bounds = array<i64: 256, 128>}, {pipeline_mode = #tpu.pipeline_mode<synchronous>, transform_indices = @transform_4, window_bounds = array<i64: 1, 128>}, {transform_indices = @transform_5, window_bounds = array<i64: 256, 128>}]} {
    %c0 = arith.constant 0 : index
    %c0_0 = arith.constant 0 : index
    %0 = vector.load %arg1[%c0, %c0_0] : memref<256x128xbf16, #tpu.memory_space<vmem>>, vector<256x128xbf16>
    %c0_1 = arith.constant 0 : index
    %c0_2 = arith.constant 0 : index
    %1 = vector.load %arg2[%c0_1, %c0_2] : memref<128x256xbf16, #tpu.memory_space<vmem>>, vector<128x256xbf16>
    %cst = arith.constant dense<0.000000e+00> : vector<256x256xf32>
    %2 = tpu.matmul %0, %1, %cst {dimension_numbers = #tpu.dot_dimension_numbers<[1], [0], [0], [1], [0, 0, 1, 1], [], []>} : vector<256x128xbf16>, vector<128x256xbf16>, vector<256x256xf32> -> vector<256x256xf32>
    %c0_3 = arith.constant 0 : index
    %c0_4 = arith.constant 0 : index
    %3 = vector.load %arg3[%c0_3, %c0_4] : memref<1x256xf32, #tpu.memory_space<vmem>>, vector<1x256xf32>
    %4 = vector.broadcast %3 : vector<1x256xf32> to vector<256x256xf32>
    %5 = arith.addf %2, %4 : vector<256x256xf32>
    %6 = arith.mulf %5, %5 : vector<256x256xf32>
    %7 = arith.mulf %5, %6 : vector<256x256xf32>
    %cst_5 = arith.constant 4.471500e-02 : f32
    %8 = vector.broadcast %cst_5 : f32 to vector<256x256xf32>
    %9 = arith.mulf %8, %7 : vector<256x256xf32>
    %10 = arith.addf %5, %9 : vector<256x256xf32>
    %cst_6 = arith.constant 0.797884583 : f32
    %11 = vector.broadcast %cst_6 : f32 to vector<256x256xf32>
    %12 = arith.mulf %11, %10 : vector<256x256xf32>
    %13 = math.tanh %12 : vector<256x256xf32>
    %cst_7 = arith.constant 1.000000e+00 : f32
    %14 = vector.broadcast %cst_7 : f32 to vector<256x256xf32>
    %15 = arith.addf %14, %13 : vector<256x256xf32>
    %cst_8 = arith.constant 5.000000e-01 : f32
    %16 = vector.broadcast %cst_8 : f32 to vector<256x256xf32>
    %17 = arith.mulf %16, %15 : vector<256x256xf32>
    %18 = arith.mulf %5, %17 : vector<256x256xf32>
    %19 = arith.truncf %18 : vector<256x256xf32> to vector<256x256xbf16>
    %c0_9 = arith.constant 0 : index
    %c0_10 = arith.constant 0 : index
    %20 = vector.load %arg4[%c0_9, %c0_10] : memref<256x128xbf16, #tpu.memory_space<vmem>>, vector<256x128xbf16>
    %cst_11 = arith.constant dense<0.000000e+00> : vector<256x128xf32>
    %21 = tpu.matmul %19, %20, %cst_11 {dimension_numbers = #tpu.dot_dimension_numbers<[1], [0], [0], [1], [0, 0, 1, 1], [], []>} : vector<256x256xbf16>, vector<256x128xbf16>, vector<256x128xf32> -> vector<256x128xf32>
    %c0_12 = arith.constant 0 : index
    %c0_13 = arith.constant 0 : index
    %22 = vector.load %arg5[%c0_12, %c0_13] : memref<1x128xf32, #tpu.memory_space<vmem>>, vector<1x128xf32>
    %23 = vector.broadcast %22 : vector<1x128xf32> to vector<256x128xf32>
    %24 = arith.addf %21, %23 : vector<256x128xf32>
    %25 = arith.extf %0 : vector<256x128xbf16> to vector<256x128xf32>
    %26 = arith.addf %24, %25 : vector<256x128xf32>
    %c0_14 = arith.constant 0 : index
    %c0_15 = arith.constant 0 : index
    %27 = vector.load %arg6[%c0_14, %c0_15] : memref<256x128xf32, #tpu.memory_space<vmem>>, vector<256x128xf32>
    tpu.vector_store %arg6[%c0_14, %c0_15], %26 {strides = array<i32>} : memref<256x128xf32, #tpu.memory_space<vmem>>, vector<256x128xf32>,
    return
  }
  func.func @transform_0(%arg0: i32) -> (i32, i32) {
    %c0_i32 = arith.constant 0 : i32
    %c0_i32_0 = arith.constant 0 : i32
    return %arg0, %c0_i32 : i32, i32
  }
  func.func @transform_1(%arg0: i32) -> (i32, i32) {
    %c0_i32 = arith.constant 0 : i32
    %c0_i32_0 = arith.constant 0 : i32
    %c0_i32_1 = arith.constant 0 : i32
    return %c0_i32, %c0_i32_0 : i32, i32
  }
  func.func @transform_2(%arg0: i32) -> (i32, i32) {
    %c0_i32 = arith.constant 0 : i32
    %c0_i32_0 = arith.constant 0 : i32
    %c0_i32_1 = arith.constant 0 : i32
    return %c0_i32, %c0_i32_0 : i32, i32
  }
  func.func @transform_3(%arg0: i32) -> (i32, i32) {
    %c0_i32 = arith.constant 0 : i32
    %c0_i32_0 = arith.constant 0 : i32
    %c0_i32_1 = arith.constant 0 : i32
    return %c0_i32, %c0_i32_0 : i32, i32
  }
  func.func @transform_4(%arg0: i32) -> (i32, i32) {
    %c0_i32 = arith.constant 0 : i32
    %c0_i32_0 = arith.constant 0 : i32
    %c0_i32_1 = arith.constant 0 : i32
    return %c0_i32, %c0_i32_0 : i32, i32
  }
  func.func @transform_5(%arg0: i32) -> (i32, i32) {
    %c0_i32 = arith.constant 0 : i32
    %c0_i32_0 = arith.constant 0 : i32
    return %arg0, %c0_i32 : i32, i32
  }
}

</mosaic_0001>

<bundles_post_ra>
// kernel: tpu_custom_call.1
= control target key start
LH: loop header
LB: loop body
LE: loop exit
PB: predicated region body
PF: predicated region fallthrough
CT: control target
= control target key end

     0   :  { %10 = vsyncpa [#allocation3], 0  ;;  %s2644_s0 = inlined_call_operand.hbm [shape: bf16[256,128], index: 0, kind: input, shape index: {}]   ;;  %s2645_s1 = inlined_call_operand.hbm [shape: bf16[128,256], index: 1, kind: input, shape index: {}]   ;;  %s2646_s2 = inlined_call_operand.hbm [shape: f32[1,256], index: 2, kind: input, shape index: {}]   ;;  %s2647_s3 = inlined_call_operand.hbm [shape: bf16[256,128], index: 3, kind: input, shape index: {}]   ;;  %s2648_s4 = inlined_call_operand.vmem [shape: f32[1,128], index: 4, kind: input, shape index: {}]   ;;  %s2649_s5 = inlined_call_operand.hbm [shape: f32[256,128], index: 5, kind: output, shape index: {}]  }
   0x1   :  { %11 = vsyncpa [#allocation6], 0 }
   0x2   :  { %12 = vsyncpa [#allocation9], 0  ;;  %s31_s20 = sshll.u32 %s2645_s1, 4  ;;  %s32_s20 = int_to_ptr.hbm [resolvable:$true] %s31_s20 }
   0x3   :  { %13 = vsyncpa [#allocation4], 0  ;;  %s2032_s21 = smov [#allocation5]   ;;  %s18_s25 = sshll.u32 %s2644_s0, 4  ;;  %s19_s25 = int_to_ptr.hbm [resolvable:$true] %s18_s25 }
   0x4   :  { %s33_s22 = sshll.u32 %s2032_s21, 4  ;;  %s2033_s26 = smov 128   ;;  %s34_s22 = int_to_ptr.vmem [resolvable:$true] %s33_s22 }
   0x5   :  { %s2034_s27 = smov 8   ;;  %s2035_s28 = smov [#allocation2]  }
   0x6   :  { %39 = dma.hbm_to_vmem [thread:$0]  %s32_s20, 2048, %s34_s22, [#allocation6], %s2033_s26, %s2033_s26, %s2034_s27  }
   0x7   :  { %s20_s29 = sshll.u32 %s2035_s28, 4  ;;  %s2036_s1 = smov 64   ;;  %s21_s29 = int_to_ptr.vmem [resolvable:$true] %s20_s29 }
   0x8   :  { %s2037_s30 = smov 4   ;;  %s45_s8 = sshll.u32 %s2646_s2, 4  ;;  %s46_s8 = int_to_ptr.hbm [resolvable:$true] %s45_s8 }
   0x9   :  { %26 = dma.hbm_to_vmem [thread:$0]  %s19_s25, 2048, %s21_s29, [#allocation3], %s2036_s1, %s2036_s1, %s2037_s30  }
   0xa   :  { %s2038_s9 = smov [#allocation7]   ;;  %s55_s12 = sshll.u32 %s2647_s3, 4  ;;  %s56_s12 = int_to_ptr.hbm [resolvable:$true] %s55_s12 }
   0xb   :  { %s47_s0 = sshll.u32 %s2038_s9, 4  ;;  %s2039_s13 = smov [#allocation8]   ;;  %s48_s0 = int_to_ptr.vmem [resolvable:$true] %s47_s0 }
   0xc   :  { %50 = dma.hbm_to_vmem [thread:$0]  %s46_s8, 32, %s48_s0, [#allocation6]  }
   0xd   :  { %s57_s14 = sshll.u32 %s2039_s13, 4  ;;  %s58_s14 = int_to_ptr.vmem [resolvable:$true] %s57_s14 }
   0xe   :  { %63 = dma.hbm_to_vmem [thread:$0]  %s56_s12, 2048, %s58_s14, [#allocation9], %s2036_s1, %s2036_s1, %s2037_s30  }
   0xf   :  { %2024 = dma.done.wait [#allocation3], 2048  }
  0x10   :  { %2025 = vsyncadd [#allocation3], 4294965248 }
  0x11   :  { %2026 = dma.done.wait [#allocation6], 2080  }
  0x12   :  { %2027 = vsyncadd [#allocation6], 4294965216 }
  0x13   :  { %2028 = dma.done.wait [#allocation9], 2048  }
  0x14   :  { %2029 = vsyncadd [#allocation9], 4294965248  ;;  %v1647_v0 = vld [vmem:[#allocation5 + $0x70] sm:$0xf]  ;;  %v1748_v1 = vld [vmem:[#allocation5 + $0x74] sm:$0xf0] }
  0x15   :  { %v1747_v2 = vld [vmem:[#allocation5 + $0x74] sm:$0xf]  ;;  %v1648_v3 = vor.u32 %v1748_v1, %v1647_v0  ;;  %v1649_v4 = vld [vmem:[#allocation5 + $0x78] sm:$0xf0]  ;;  %v1639_v5 = vld [vmem:[#allocation5 + $0x60] sm:$0xf] }
  0x16   :  { %v1746_v6 = vld [vmem:[#allocation5 + $0x64] sm:$0xf0]  ;;  %v1652_v7 = vor.u32 %v1747_v2, %v1649_v4  ;;  %v1745_v8 = vld [vmem:[#allocation5 + $0x64] sm:$0xf]  ;;  %v1641_v9 = vld [vmem:[#allocation5 + $0x68] sm:$0xf0] }
  0x17   :  { %312 = vmatpush.bf16.msra.mxu0 %v1648_v3  ;;  %v1640_v10 = vor.u32 %v1746_v6, %v1639_v5  ;;  %v1644_v11 = vor.u32 %v1745_v8, %v1641_v9  ;;  %v1631_v12 = vld [vmem:[#allocation5 + $0x50] sm:$0xf]  ;;  %v1744_v13 = vld [vmem:[#allocation5 + $0x54] sm:$0xf0]  ;;  %v1743_v14 = vld [vmem:[#allocation5 + $0x54] sm:$0xf] }
  0x18   :  { %401 = vmatpush.bf16.msra.mxu1 %v1652_v7  ;;  %v1633_v15 = vld [vmem:[#allocation5 + $0x58] sm:$0xf0]  ;;  %v1632_v16 = vor.u32 %v1744_v13, %v1631_v12  ;;  %v1623_v18 = vld [vmem:[#allocation5 + $0x40] sm:$0xf]  ;;  %v1742_v19 = vld [vmem:[#allocation5 + $0x44] sm:$0xf0] }
  0x19   :  { %v1636_v17 = vor.u32 %v1743_v14, %v1633_v15  ;;  %v1741_v20 = vld [vmem:[#allocation5 + $0x44] sm:$0xf]  ;;  %v1625_v21 = vld [vmem:[#allocation5 + $0x48] sm:$0xf0]  ;;  %v1624_v22 = vor.u32 %v1742_v19, %v1623_v18  ;;  %v1615_v24 = vld [vmem:[#allocation5 + $0x30] sm:$0xf] }
  0x1a   :  { %v1628_v23 = vor.u32 %v1741_v20, %v1625_v21  ;;  %v1740_v25 = vld [vmem:[#allocation5 + $0x34] sm:$0xf0]  ;;  %v1739_v26 = vld [vmem:[#allocation5 + $0x34] sm:$0xf]  ;;  %v1617_v27 = vld [vmem:[#allocation5 + $0x38] sm:$0xf0] }
  0x1b   :  { %313 = vmatpush.bf16.msra.mxu0 %v1640_v10  ;;  %v1616_v28 = vor.u32 %v1740_v25, %v1615_v24  ;;  %v1620_v29 = vor.u32 %v1739_v26, %v1617_v27  ;;  %v1607_v30 = vld [vmem:[#allocation5 + $0x20] sm:$0xf]  ;;  %v1738_v31 = vld [vmem:[#allocation5 + $0x24] sm:$0xf0]  ;;  %v1737_v32 = vld [vmem:[#allocation5 + $0x24] sm:$0xf] }
  0x1c   :  { %402 = vmatpush.bf16.msra.mxu1 %v1644_v11  ;;  %v1609_v33 = vld [vmem:[#allocation5 + $0x28] sm:$0xf0]  ;;  %v1608_v34 = vor.u32 %v1738_v31, %v1607_v30  ;;  %v1599_v36 = vld [vmem:[#allocation5 + $0x10] sm:$0xf]  ;;  %v1736_v37 = vld [vmem:[#allocation5 + $0x14] sm:$0xf0] }
  0x1d   :  { %v1612_v35 = vor.u32 %v1737_v32, %v1609_v33  ;;  %v1735_v38 = vld [vmem:[#allocation5 + $0x14] sm:$0xf]  ;;  %v1601_v39 = vld [vmem:[#allocation5 + $0x18] sm:$0xf0]  ;;  %v1600_v40 = vor.u32 %v1736_v37, %v1599_v36  ;;  %v1591_v42 = vld [vmem:[#allocation5] sm:$0xf] }
  0x1e   :  { %v1604_v41 = vor.u32 %v1735_v38, %v1601_v39  ;;  %v1734_v43 = vld [vmem:[#allocation5 + $0x4] sm:$0xf0]  ;;  %v1733_v44 = vld [vmem:[#allocation5 + $0x4] sm:$0xf]  ;;  %v1593_v45 = vld [vmem:[#allocation5 + $0x8] sm:$0xf0] }
  0x1f   :  { %314 = vmatpush.bf16.msra.mxu0 %v1632_v16  ;;  %v1592_v46 = vor.u32 %v1734_v43, %v1591_v42  ;;  %v1596_v47 = vor.u32 %v1733_v44, %v1593_v45  ;;  %v1717_v48 = vld [vmem:[#allocation2] sm:$0xff]  ;;  %v1718_v49 = vld [vmem:[#allocation2 + $0x8] sm:$0xff]  ;;  %v1719_v50 = vld [vmem:[#allocation2 + $0x10] sm:$0xff]  ;;  %s1510_s20 = sshll.u32 %s2649_s5, 4  ;;  %s1511_s20 = int_to_ptr.hbm [resolvable:$true] %s1510_s20 }
  0x20   :  { %403 = vmatpush.bf16.msra.mxu1 %v1636_v17  ;;  %v1720_v51 = vld [vmem:[#allocation2 + $0x18] sm:$0xff]  ;;  %v1721_v52 = vld [vmem:[#allocation2 + $0x20] sm:$0xff]  ;;  %v1722_v53 = vld [vmem:[#allocation2 + $0x28] sm:$0xff] }
  0x21   :  { %v1723_v54 = vld [vmem:[#allocation2 + $0x30] sm:$0xff]  ;;  %v1756_v55 = vld [vmem:[#allocation8 + $0x38] sm:$0xff]  ;;  %v1753_v62 = vld [vmem:[#allocation8 + $0x20] sm:$0xff] }
  0x22   :  { %v1764_v56 = vld [vmem:[#allocation8 + $0x78] sm:$0xff]  ;;  %1230 = vmatpush.bf16.msra.mxu2 %v1756_v55  ;;  %v1755_v57 = vld [vmem:[#allocation8 + $0x30] sm:$0xff]  ;;  %v1754_v59 = vld [vmem:[#allocation8 + $0x28] sm:$0xff] }
  0x23   :  { %315 = vmatpush.bf16.msra.mxu0 %v1624_v22  ;;  %1319 = vmatpush.bf16.msra.mxu3 %v1764_v56  ;;  %v1763_v58 = vld [vmem:[#allocation8 + $0x70] sm:$0xff]  ;;  %v1762_v60 = vld [vmem:[#allocation8 + $0x68] sm:$0xff]  ;;  %v1761_v63 = vld [vmem:[#allocation8 + $0x60] sm:$0xff] }
  0x24   :  { %404 = vmatpush.bf16.msra.mxu1 %v1628_v23  ;;  %v1724_v61 = vld [vmem:[#allocation2 + $0x38] sm:$0xff]  ;;  %v130_v4 = vld [vmem:[#allocation7] sm:$0x3]  ;;  %v1750_v5 = vld [vmem:[#allocation8 + $0x8] sm:$0xff] }
  0x25   :  { %v1752_v0 = vld [vmem:[#allocation8 + $0x18] sm:$0xff]  ;;  %v1751_v2 = vld [vmem:[#allocation8 + $0x10] sm:$0xff]  ;;  %v1758_v6 = vld [vmem:[#allocation8 + $0x48] sm:$0xff]  ;;  %v2086_v7 = vperm.slane %v130_v4, 0  ;;  %v2088_v8 = vperm.slane %v130_v4, 1 }
  0x26   :  { %1231 = vmatpush.bf16.msra.mxu2 %v1755_v57  ;;  %v1760_v1 = vld [vmem:[#allocation8 + $0x58] sm:$0xff]  ;;  %v1759_v3 = vld [vmem:[#allocation8 + $0x50] sm:$0xff]  ;;  %v1749_v11 = vld [vmem:[#allocation8] sm:$0xff] }
  0x27   :  { %316 = vmatpush.bf16.msra.mxu0 %v1616_v28  ;;  %1320 = vmatpush.bf16.msra.mxu3 %v1763_v58  ;;  %v1725_v9 = vld [vmem:[#allocation2 + $0x40] sm:$0xff] }
  0x28   :  { %405 = vmatpush.bf16.msra.mxu1 %v1620_v29  ;;  %v1757_v12 = vld [vmem:[#allocation8 + $0x40] sm:$0xff] }
  0x2a   :  { %1232 = vmatpush.bf16.msra.mxu2 %v1754_v59 }
  0x2b   :  { %317 = vmatpush.bf16.msra.mxu0 %v1608_v34  ;;  %1321 = vmatpush.bf16.msra.mxu3 %v1762_v60 }
  0x2c   :  { %406 = vmatpush.bf16.msra.mxu1 %v1612_v35  ;;  %v1726_v35 = vld [vmem:[#allocation2 + $0x48] sm:$0xff] }
  0x2e   :  { %1233 = vmatpush.bf16.msra.mxu2 %v1753_v62 }
  0x2f   :  { %318 = vmatpush.bf16.msra.mxu0 %v1600_v40  ;;  %1322 = vmatpush.bf16.msra.mxu3 %v1761_v63 }
  0x30   :  { %407 = vmatpush.bf16.msra.mxu1 %v1604_v41 }
  0x32   :  { %1234 = vmatpush.bf16.msra.mxu2 %v1752_v0 }
  0x33   :  { %319 = vmatpush.bf16.msra.mxu0 %v1592_v46  ;;  %1323 = vmatpush.bf16.msra.mxu3 %v1760_v1 }
  0x34   :  { %408 = vmatpush.bf16.msra.mxu1 %v1596_v47 }
  0x36   :  { %320 = vmatmul.bf16.vlgmr.msra.gmra.mxu0 %v1717_v48  ;;  %1235 = vmatpush.bf16.msra.mxu2 %v1751_v2 }
  0x37   :  { %409 = vmatmul.bf16.vlgmr.msra.gmra.mxu1 %v1717_v48  ;;  %1324 = vmatpush.bf16.msra.mxu3 %v1759_v3 }
  0x3a   :  { %1236 = vmatpush.bf16.msra.mxu2 %v1750_v5 }
  0x3b   :  { %1325 = vmatpush.bf16.msra.mxu3 %v1758_v6 }
  0x3e   :  { %1237 = vmatpush.bf16.msra.mxu2 %v1749_v11 }
  0x3f   :  { %1326 = vmatpush.bf16.msra.mxu3 %v1757_v12 }
  0x46   :  { %325 = vmatmul.bf16.gmra.mxu0 %v1718_v49 }
  0x47   :  { %414 = vmatmul.bf16.gmra.mxu1 %v1718_v49 }
  0x56   :  { %330 = vmatmul.bf16.gmra.mxu0 %v1719_v50 }
  0x57   :  { %419 = vmatmul.bf16.gmra.mxu1 %v1719_v50 }
  0x66   :  { %335 = vmatmul.bf16.gmra.mxu0 %v1720_v51 }
  0x67   :  { %424 = vmatmul.bf16.gmra.mxu1 %v1720_v51 }
  0x76   :  { %340 = vmatmul.bf16.gmra.mxu0 %v1721_v52 }
  0x77   :  { %429 = vmatmul.bf16.gmra.mxu1 %v1721_v52 }
  0x86   :  { %345 = vmatmul.bf16.gmra.mxu0 %v1722_v53 }
  0x87   :  { %434 = vmatmul.bf16.gmra.mxu1 %v1722_v53 }
  0x96   :  { %350 = vmatmul.bf16.gmra.mxu0 %v1723_v54 }
  0x97   :  { %439 = vmatmul.bf16.gmra.mxu1 %v1723_v54 }
  0xa6   :  { %355 = vmatmul.bf16.gmra.mxu0 %v1724_v61 }
  0xa7   :  { %444 = vmatmul.bf16.gmra.mxu1 %v1724_v61 }
  0xb3   :  { %v321_v10 = vpop.f32.mrf.mxu0 }
  0xb4   :  { %v2091_v13 = vadd.f32 %v321_v10, %v2086_v7  ;;  %v410_v14 = vpop.f32.mrf.mxu1 }
  0xb5   :  { %v2094_v15 = vadd.f32 %v410_v14, %v2088_v8  ;;  %v1727_v14 = vld [vmem:[#allocation2 + $0x50] sm:$0xff] }
  0xb6   :  { %v490_v16 = vmul.f32 %v2091_v13, %v2091_v13  ;;  %360 = vmatmul.bf16.gmra.mxu0 %v1725_v9 }
  0xb7   :  { %v491_v17 = vmul.f32 %v2094_v15, %v2094_v15  ;;  %449 = vmatmul.bf16.gmra.mxu1 %v1725_v9 }
  0xb8   :  { %v554_v18 = vmul.f32 %v490_v16, %v2091_v13 }
  0xb9   :  { %v555_v19 = vmul.f32 %v491_v17, %v2094_v15 }
  0xba   :  { %v618_v20 = vmul.f32 0.044715, %v554_v18 }
  0xbb   :  { %v619_v21 = vmul.f32 0.044715, %v555_v19  ;;  %v323_v22 = vpop.f32.mrf.mxu0 }
  0xbc   :  { %v682_v23 = vadd.f32 %v618_v20, %v2091_v13  ;;  %v2104_v24 = vadd.f32 %v323_v22, %v2086_v7  ;;  %v412_v25 = vpop.f32.mrf.mxu1 }
  0xbd   :  { %v683_v26 = vadd.f32 %v619_v21, %v2094_v15  ;;  %v2108_v27 = vadd.f32 %v412_v25, %v2088_v8 }
  0xbe   :  { %v492_v28 = vmul.f32 %v2104_v24, %v2104_v24  ;;  %v746_v29 = vmul.f32 0.7978846, %v682_v23 }
  0xbf   :  { %v493_v30 = vmul.f32 %v2108_v27, %v2108_v27  ;;  %v747_v31 = vmul.f32 0.7978846, %v683_v26 }
  0xc0   :  { %v556_v32 = vmul.f32 %v492_v28, %v2104_v24  ;;  %1775 = vtanh.f32 %v746_v29 }
  0xc1   :  { %v557_v33 = vmul.f32 %v493_v30, %v2108_v27  ;;  %1777 = vtanh.f32 %v747_v31 }
  0xc2   :  { %v620_v34 = vmul.f32 0.044715, %v556_v32 }
  0xc3   :  { %v621_v36 = vmul.f32 0.044715, %v557_v33  ;;  %v326_v37 = vpop.f32.mrf.mxu0 }
  0xc4   :  { %v2117_v38 = vadd.f32 %v326_v37, %v2086_v7  ;;  %v415_v39 = vpop.f32.mrf.mxu1  ;;  %v684_v40 = vadd.f32 %v620_v34, %v2104_v24 }
  0xc5   :  { %v2121_v41 = vadd.f32 %v415_v39, %v2088_v8  ;;  %v685_v42 = vadd.f32 %v621_v36, %v2108_v27 }
  0xc6   :  { %v494_v43 = vmul.f32 %v2117_v38, %v2117_v38  ;;  %365 = vmatmul.bf16.gmra.mxu0 %v1726_v35  ;;  %v748_v44 = vmul.f32 0.7978846, %v684_v40  ;;  %v1776_v47 = vpop.eup %1775 }
  0xc7   :  { %v495_v45 = vmul.f32 %v2121_v41, %v2121_v41  ;;  %454 = vmatmul.bf16.gmra.mxu1 %v1726_v35  ;;  %v749_v46 = vmul.f32 0.7978846, %v685_v42  ;;  %v1778_v49 = vpop.eup %1777  ;;  %v874_v54 = vadd.f32 1.0, %v1776_v47 }
  0xc8   :  { %v558_v48 = vmul.f32 %v494_v43, %v2117_v38  ;;  %1779 = vtanh.f32 %v748_v44  ;;  %v875_v58 = vadd.f32 1.0, %v1778_v49 }
  0xc9   :  { %v559_v50 = vmul.f32 %v495_v45, %v2121_v41  ;;  %1781 = vtanh.f32 %v749_v46  ;;  %v938_v3 = vmul.f32 0.5, %v874_v54 }
  0xca   :  { %v622_v51 = vmul.f32 0.044715, %v558_v48  ;;  %v939_v9 = vmul.f32 0.5, %v875_v58 }
  0xcb   :  { %v623_v52 = vmul.f32 0.044715, %v559_v50  ;;  %v328_v53 = vpop.f32.mrf.mxu0  ;;  %v1002_v19 = vmul.f32 %v938_v3, %v2091_v13 }
  0xcc   :  { %v686_v55 = vadd.f32 %v622_v51, %v2117_v38  ;;  %v2132_v56 = vadd.f32 %v328_v53, %v2086_v7  ;;  %v417_v57 = vpop.f32.mrf.mxu1  ;;  %v1003_v23 = vmul.f32 %v939_v9, %v2094_v15 }
  0xcd   :  { %v687_v59 = vadd.f32 %v623_v52, %v2121_v41  ;;  %v2136_v60 = vadd.f32 %v417_v57, %v2088_v8 }
  0xce   :  { %v1780_v61 = vpop.eup %1779  ;;  %v496_v62 = vmul.f32 %v2132_v56, %v2132_v56  ;;  %v750_v63 = vmul.f32 0.7978846, %v686_v55 }
  0xcf   :  { %v1782_v0 = vpop.eup %1781  ;;  %v497_v1 = vmul.f32 %v2136_v60, %v2136_v60  ;;  %v876_v2 = vadd.f32 1.0, %v1780_v61  ;;  %v751_v4 = vmul.f32 0.7978846, %v687_v59 }
  0xd0   :  { %v560_v5 = vmul.f32 %v496_v62, %v2132_v56  ;;  %v877_v6 = vadd.f32 1.0, %v1782_v0  ;;  %1783 = vtanh.f32 %v750_v63  ;;  %v1728_v0 = vld [vmem:[#allocation2 + $0x58] sm:$0xff] }
  0xd1   :  { %v561_v10 = vmul.f32 %v497_v1, %v2136_v60  ;;  %v940_v11 = vmul.f32 0.5, %v876_v2  ;;  %1785 = vtanh.f32 %v751_v4 }
  0xd2   :  { %v624_v12 = vmul.f32 0.044715, %v560_v5  ;;  %v941_v16 = vmul.f32 0.5, %v877_v6 }
  0xd3   :  { %v625_v17 = vmul.f32 0.044715, %v561_v10  ;;  %v331_v18 = vpop.f32.mrf.mxu0  ;;  %v1004_v20 = vmul.f32 %v940_v11, %v2104_v24 }
  0xd4   :  { %v2147_v21 = vadd.f32 %v331_v18, %v2086_v7  ;;  %v420_v22 = vpop.f32.mrf.mxu1  ;;  %v1005_v25 = vmul.f32 %v941_v16, %v2108_v27  ;;  %v688_v26 = vadd.f32 %v624_v12, %v2132_v56 }
  0xd5   :  { %v2153_v28 = vadd.f32 %v420_v22, %v2088_v8  ;;  %v1066_v29 = vpack.c.bf16 %v1004_v20, %v1002_v19  ;;  %v689_v30 = vadd.f32 %v625_v17, %v2136_v60 }
  0xd6   :  { %v498_v13 = vmul.f32 %v2147_v21, %v2147_v21  ;;  %370 = vmatmul.bf16.gmra.mxu0 %v1727_v14  ;;  %v1067_v24 = vpack.c.bf16 %v1005_v25, %v1003_v23  ;;  %v752_v31 = vmul.f32 0.7978846, %v688_v26  ;;  %v1784_v27 = vpop.eup %1783 }
  0xd7   :  { %v499_v32 = vmul.f32 %v2153_v28, %v2153_v28  ;;  %459 = vmatmul.bf16.gmra.mxu1 %v1727_v14  ;;  %1238 = vmatmul.bf16.vlgmr.msra.gmra.mxu2 %v1066_v29  ;;  %v753_v15 = vmul.f32 0.7978846, %v689_v30  ;;  %v1786_v34 = vpop.eup %1785  ;;  %v878_v40 = vadd.f32 1.0, %v1784_v27 }
  0xd8   :  { %v562_v33 = vmul.f32 %v498_v13, %v2147_v21  ;;  %1327 = vmatmul.bf16.vlgmr.msra.gmra.mxu3 %v1067_v24  ;;  %1787 = vtanh.f32 %v752_v31  ;;  %v879_v45 = vadd.f32 1.0, %v1786_v34 }
  0xd9   :  { %v563_v35 = vmul.f32 %v499_v32, %v2153_v28  ;;  %1789 = vtanh.f32 %v753_v15  ;;  %v942_v54 = vmul.f32 0.5, %v878_v40 }
  0xda   :  { %v626_v36 = vmul.f32 0.044715, %v562_v33  ;;  %v943_v59 = vmul.f32 0.5, %v879_v45 }
  0xdb   :  { %v627_v37 = vmul.f32 0.044715, %v563_v35  ;;  %v333_v39 = vpop.f32.mrf.mxu0  ;;  %v1006_v4 = vmul.f32 %v942_v54, %v2117_v38 }
  0xdc   :  { %v690_v42 = vadd.f32 %v626_v36, %v2147_v21  ;;  %v2164_v43 = vadd.f32 %v333_v39, %v2086_v7  ;;  %v422_v44 = vpop.f32.mrf.mxu1  ;;  %v1007_v10 = vmul.f32 %v943_v59, %v2121_v41 }
  0xdd   :  { %v691_v46 = vadd.f32 %v627_v37, %v2153_v28  ;;  %v2168_v47 = vadd.f32 %v422_v44, %v2088_v8 }
  0xde   :  { %v1788_v48 = vpop.eup %1787  ;;  %v500_v49 = vmul.f32 %v2164_v43, %v2164_v43  ;;  %v754_v50 = vmul.f32 0.7978846, %v690_v42 }
  0xdf   :  { %v1790_v51 = vpop.eup %1789  ;;  %v501_v52 = vmul.f32 %v2168_v47, %v2168_v47  ;;  %v880_v53 = vadd.f32 1.0, %v1788_v48  ;;  %v755_v55 = vmul.f32 0.7978846, %v691_v46 }
  0xe0   :  { %v564_v57 = vmul.f32 %v500_v49, %v2164_v43  ;;  %v881_v58 = vadd.f32 1.0, %v1790_v51  ;;  %1791 = vtanh.f32 %v754_v50  ;;  %v1729_v51 = vld [vmem:[#allocation2 + $0x60] sm:$0xff] }
  0xe1   :  { %v565_v61 = vmul.f32 %v501_v52, %v2168_v47  ;;  %v944_v62 = vmul.f32 0.5, %v880_v53  ;;  %1793 = vtanh.f32 %v755_v55 }
  0xe2   :  { %v628_v63 = vmul.f32 0.044715, %v564_v57  ;;  %v945_v1 = vmul.f32 0.5, %v881_v58 }
  0xe3   :  { %v629_v2 = vmul.f32 0.044715, %v565_v61  ;;  %v336_v3 = vpop.f32.mrf.mxu0  ;;  %v1008_v5 = vmul.f32 %v944_v62, %v2132_v56 }
  0xe4   :  { %v2179_v6 = vadd.f32 %v336_v3, %v2086_v7  ;;  %v425_v9 = vpop.f32.mrf.mxu1  ;;  %v1009_v11 = vmul.f32 %v945_v1, %v2136_v60  ;;  %v692_v12 = vadd.f32 %v628_v63, %v2164_v43 }
  0xe5   :  { %v2185_v14 = vadd.f32 %v425_v9, %v2088_v8  ;;  %v1068_v16 = vpack.c.bf16 %v1008_v5, %v1006_v4  ;;  %v693_v17 = vadd.f32 %v629_v2, %v2168_v47 }
  0xe6   :  { %v502_v38 = vmul.f32 %v2179_v6, %v2179_v6  ;;  %375 = vmatmul.bf16.gmra.mxu0 %v1728_v0  ;;  %v1069_v56 = vpack.c.bf16 %v1009_v11, %v1007_v10  ;;  %v756_v18 = vmul.f32 0.7978846, %v692_v12  ;;  %v1792_v60 = vpop.eup %1791 }
  0xe7   :  { %v503_v19 = vmul.f32 %v2185_v14, %v2185_v14  ;;  %464 = vmatmul.bf16.gmra.mxu1 %v1728_v0  ;;  %1243 = vmatmul.bf16.gmra.mxu2 %v1068_v16  ;;  %v757_v41 = vmul.f32 0.7978846, %v693_v17  ;;  %v1794_v22 = vpop.eup %1793  ;;  %v882_v30 = vadd.f32 1.0, %v1792_v60 }
  0xe8   :  { %v566_v20 = vmul.f32 %v502_v38, %v2179_v6  ;;  %1332 = vmatmul.bf16.gmra.mxu3 %v1069_v56  ;;  %1795 = vtanh.f32 %v756_v18  ;;  %v883_v32 = vadd.f32 1.0, %v1794_v22 }
  0xe9   :  { %v567_v23 = vmul.f32 %v503_v19, %v2185_v14  ;;  %1797 = vtanh.f32 %v757_v41  ;;  %v946_v40 = vmul.f32 0.5, %v882_v30 }
  0xea   :  { %v630_v25 = vmul.f32 0.044715, %v566_v20  ;;  %v947_v46 = vmul.f32 0.5, %v883_v32 }
  0xeb   :  { %v631_v26 = vmul.f32 0.044715, %v567_v23  ;;  %v338_v29 = vpop.f32.mrf.mxu0  ;;  %v1010_v55 = vmul.f32 %v946_v40, %v2147_v21 }
  0xec   :  { %v694_v13 = vadd.f32 %v630_v25, %v2179_v6  ;;  %v2196_v24 = vadd.f32 %v338_v29, %v2086_v7  ;;  %v427_v31 = vpop.f32.mrf.mxu1  ;;  %v1011_v61 = vmul.f32 %v947_v46, %v2153_v28 }
  0xed   :  { %v695_v15 = vadd.f32 %v631_v26, %v2185_v14  ;;  %v2200_v27 = vadd.f32 %v427_v31, %v2088_v8 }
  0xee   :  { %v1796_v33 = vpop.eup %1795  ;;  %v504_v34 = vmul.f32 %v2196_v24, %v2196_v24  ;;  %v758_v35 = vmul.f32 0.7978846, %v694_v13 }
  0xef   :  { %v1798_v36 = vpop.eup %1797  ;;  %v505_v37 = vmul.f32 %v2200_v27, %v2200_v27  ;;  %v884_v39 = vadd.f32 1.0, %v1796_v33  ;;  %v759_v42 = vmul.f32 0.7978846, %v695_v15 }
  0xf0   :  { %v568_v44 = vmul.f32 %v504_v34, %v2196_v24  ;;  %v885_v45 = vadd.f32 1.0, %v1798_v36  ;;  %1799 = vtanh.f32 %v758_v35  ;;  %v1730_v36 = vld [vmem:[#allocation2 + $0x68] sm:$0xff] }
  0xf1   :  { %v569_v48 = vmul.f32 %v505_v37, %v2200_v27  ;;  %v948_v49 = vmul.f32 0.5, %v884_v39  ;;  %1801 = vtanh.f32 %v759_v42 }
  0xf2   :  { %v632_v50 = vmul.f32 0.044715, %v568_v44  ;;  %v949_v52 = vmul.f32 0.5, %v885_v45 }
  0xf3   :  { %v633_v53 = vmul.f32 0.044715, %v569_v48  ;;  %v341_v54 = vpop.f32.mrf.mxu0  ;;  %v1012_v57 = vmul.f32 %v948_v49, %v2164_v43 }
  0xf4   :  { %v2211_v58 = vadd.f32 %v341_v54, %v2086_v7  ;;  %v430_v59 = vpop.f32.mrf.mxu1  ;;  %v1013_v62 = vmul.f32 %v949_v52, %v2168_v47  ;;  %v696_v63 = vadd.f32 %v632_v50, %v2196_v24 }
  0xf5   :  { %v2217_v0 = vadd.f32 %v430_v59, %v2088_v8  ;;  %v1070_v1 = vpack.c.bf16 %v1012_v57, %v1010_v55  ;;  %v697_v2 = vadd.f32 %v633_v53, %v2200_v27 }
  0xf6   :  { %v506_v21 = vmul.f32 %v2211_v58, %v2211_v58  ;;  %380 = vmatmul.bf16.gmra.mxu0 %v1729_v51  ;;  %v1071_v43 = vpack.c.bf16 %v1013_v62, %v1011_v61  ;;  %v760_v3 = vmul.f32 0.7978846, %v696_v63  ;;  %v1800_v47 = vpop.eup %1799 }
  0xf7   :  { %v507_v4 = vmul.f32 %v2217_v0, %v2217_v0  ;;  %469 = vmatmul.bf16.gmra.mxu1 %v1729_v51  ;;  %1248 = vmatmul.bf16.gmra.mxu2 %v1070_v1  ;;  %v761_v28 = vmul.f32 0.7978846, %v697_v2  ;;  %v1802_v9 = vpop.eup %1801  ;;  %v886_v17 = vadd.f32 1.0, %v1800_v47 }
  0xf8   :  { %v570_v5 = vmul.f32 %v506_v21, %v2211_v58  ;;  %1337 = vmatmul.bf16.gmra.mxu3 %v1071_v43  ;;  %1803 = vtanh.f32 %v760_v3  ;;  %v887_v19 = vadd.f32 1.0, %v1802_v9 }
  0xf9   :  { %v571_v10 = vmul.f32 %v507_v4, %v2217_v0  ;;  %1805 = vtanh.f32 %v761_v28  ;;  %v950_v30 = vmul.f32 0.5, %v886_v17 }
  0xfa   :  { %v634_v11 = vmul.f32 0.044715, %v570_v5  ;;  %v951_v15 = vmul.f32 0.5, %v887_v19 }
  0xfb   :  { %v635_v12 = vmul.f32 0.044715, %v571_v10  ;;  %v343_v16 = vpop.f32.mrf.mxu0  ;;  %v1014_v42 = vmul.f32 %v950_v30, %v2179_v6 }
  0xfc   :  { %v698_v38 = vadd.f32 %v634_v11, %v2211_v58  ;;  %v2228_v56 = vadd.f32 %v343_v16, %v2086_v7  ;;  %v432_v18 = vpop.f32.mrf.mxu1  ;;  %v1015_v49 = vmul.f32 %v951_v15, %v2185_v14 }
  0xfd   :  { %v699_v41 = vadd.f32 %v635_v12, %v2217_v0  ;;  %v2232_v60 = vadd.f32 %v432_v18, %v2088_v8 }
  0xfe   :  { %v1804_v20 = vpop.eup %1803  ;;  %v508_v22 = vmul.f32 %v2228_v56, %v2228_v56  ;;  %v762_v23 = vmul.f32 0.7978846, %v698_v38 }
  0xff   :  { %v1806_v25 = vpop.eup %1805  ;;  %v509_v26 = vmul.f32 %v2232_v60, %v2232_v60  ;;  %v888_v29 = vadd.f32 1.0, %v1804_v20  ;;  %v763_v13 = vmul.f32 0.7978846, %v699_v41 }
 0x100   :  { %v572_v31 = vmul.f32 %v508_v22, %v2228_v56  ;;  %v889_v32 = vadd.f32 1.0, %v1806_v25  ;;  %1807 = vtanh.f32 %v762_v23  ;;  %v1731_v25 = vld [vmem:[#allocation2 + $0x70] sm:$0xff] }
 0x101   :  { %v573_v33 = vmul.f32 %v509_v26, %v2232_v60  ;;  %v952_v34 = vmul.f32 0.5, %v888_v29  ;;  %1809 = vtanh.f32 %v763_v13 }
 0x102   :  { %v636_v35 = vmul.f32 0.044715, %v572_v31  ;;  %v953_v37 = vmul.f32 0.5, %v889_v32 }
 0x103   :  { %v637_v39 = vmul.f32 0.044715, %v573_v33  ;;  %v346_v40 = vpop.f32.mrf.mxu0  ;;  %v1016_v44 = vmul.f32 %v952_v34, %v2196_v24 }
 0x104   :  { %v700_v45 = vadd.f32 %v636_v35, %v2228_v56  ;;  %v2244_v46 = vadd.f32 %v346_v40, %v2086_v7  ;;  %v435_v48 = vpop.f32.mrf.mxu1  ;;  %v1017_v50 = vmul.f32 %v953_v37, %v2200_v27 }
 0x105   :  { %v701_v51 = vadd.f32 %v637_v39, %v2232_v60  ;;  %v2250_v52 = vadd.f32 %v435_v48, %v2088_v8  ;;  %v1072_v53 = vpack.c.bf16 %v1016_v44, %v1014_v42 }
 0x106   :  { %v510_v6 = vmul.f32 %v2244_v46, %v2244_v46  ;;  %385 = vmatmul.bf16.gmra.mxu0 %v1730_v36  ;;  %v1073_v24 = vpack.c.bf16 %v1017_v50, %v1015_v49  ;;  %v764_v54 = vmul.f32 0.7978846, %v700_v45  ;;  %v1808_v57 = vpop.eup %1807 }
 0x107   :  { %v511_v55 = vmul.f32 %v2250_v52, %v2250_v52  ;;  %474 = vmatmul.bf16.gmra.mxu1 %v1730_v36  ;;  %1253 = vmatmul.bf16.gmra.mxu2 %v1072_v53  ;;  %v765_v14 = vmul.f32 0.7978846, %v701_v51  ;;  %v1810_v59 = vpop.eup %1809  ;;  %v890_v2 = vadd.f32 1.0, %v1808_v57 }
 0x108   :  { %v574_v27 = vmul.f32 %v510_v6, %v2244_v46  ;;  %1342 = vmatmul.bf16.gmra.mxu3 %v1073_v24  ;;  %1811 = vtanh.f32 %v764_v54  ;;  %v891_v4 = vadd.f32 1.0, %v1810_v59 }
 0x109   :  { %v575_v61 = vmul.f32 %v511_v55, %v2250_v52  ;;  %1813 = vtanh.f32 %v765_v14  ;;  %v954_v17 = vmul.f32 0.5, %v890_v2 }
 0x10a   :  { %v638_v62 = vmul.f32 0.044715, %v574_v27  ;;  %v955_v41 = vmul.f32 0.5, %v891_v4 }
 0x10b   :  { %v639_v63 = vmul.f32 0.044715, %v575_v61  ;;  %v348_v1 = vpop.f32.mrf.mxu0  ;;  %v1018_v13 = vmul.f32 %v954_v17, %v2211_v58 }
 0x10c   :  { %v702_v21 = vadd.f32 %v638_v62, %v2244_v46  ;;  %v2260_v43 = vadd.f32 %v348_v1, %v2086_v7  ;;  %v437_v3 = vpop.f32.mrf.mxu1  ;;  %v1019_v34 = vmul.f32 %v955_v41, %v2217_v0 }
 0x10d   :  { %v703_v28 = vadd.f32 %v639_v63, %v2250_v52  ;;  %v2264_v47 = vadd.f32 %v437_v3, %v2088_v8 }
 0x10e   :  { %v1812_v5 = vpop.eup %1811  ;;  %v512_v9 = vmul.f32 %v2260_v43, %v2260_v43  ;;  %v766_v10 = vmul.f32 0.7978846, %v702_v21 }
 0x10f   :  { %v1814_v11 = vpop.eup %1813  ;;  %v513_v12 = vmul.f32 %v2264_v47, %v2264_v47  ;;  %v892_v16 = vadd.f32 1.0, %v1812_v5  ;;  %v767_v38 = vmul.f32 0.7978846, %v703_v28 }
 0x110   :  { %v576_v18 = vmul.f32 %v512_v9, %v2260_v43  ;;  %v893_v19 = vadd.f32 1.0, %v1814_v11  ;;  %1815 = vtanh.f32 %v766_v10  ;;  %v1732_v11 = vld [vmem:[#allocation2 + $0x78] sm:$0xff] }
 0x111   :  { %v577_v20 = vmul.f32 %v513_v12, %v2264_v47  ;;  %v956_v22 = vmul.f32 0.5, %v892_v16  ;;  %1817 = vtanh.f32 %v767_v38 }
 0x112   :  { %v640_v23 = vmul.f32 0.044715, %v576_v18  ;;  %v957_v26 = vmul.f32 0.5, %v893_v19 }
 0x113   :  { %v641_v29 = vmul.f32 0.044715, %v577_v20  ;;  %v351_v30 = vpop.f32.mrf.mxu0  ;;  %v1020_v31 = vmul.f32 %v956_v22, %v2228_v56 }
 0x114   :  { %v704_v32 = vadd.f32 %v640_v23, %v2260_v43  ;;  %v2276_v15 = vadd.f32 %v351_v30, %v2086_v7  ;;  %v440_v33 = vpop.f32.mrf.mxu1  ;;  %v1021_v35 = vmul.f32 %v957_v26, %v2232_v60 }
 0x115   :  { %v705_v36 = vadd.f32 %v641_v29, %v2264_v47  ;;  %v2282_v37 = vadd.f32 %v440_v33, %v2088_v8  ;;  %v1074_v39 = vpack.c.bf16 %v1020_v31, %v1018_v13 }
 0x116   :  { %v514_v58 = vmul.f32 %v2276_v15, %v2276_v15  ;;  %390 = vmatmul.bf16.gmra.mxu0 %v1731_v25  ;;  %v1075_v56 = vpack.c.bf16 %v1021_v35, %v1019_v34  ;;  %v768_v40 = vmul.f32 0.7978846, %v704_v32  ;;  %v1816_v44 = vpop.eup %1815 }
 0x117   :  { %v515_v42 = vmul.f32 %v2282_v37, %v2282_v37  ;;  %479 = vmatmul.bf16.gmra.mxu1 %v1731_v25  ;;  %1258 = vmatmul.bf16.gmra.mxu2 %v1074_v39  ;;  %v769_v0 = vmul.f32 0.7978846, %v705_v36  ;;  %v1818_v45 = vpop.eup %1817  ;;  %v894_v53 = vadd.f32 1.0, %v1816_v44 }
 0x118   :  { %v578_v60 = vmul.f32 %v514_v58, %v2276_v15  ;;  %1347 = vmatmul.bf16.gmra.mxu3 %v1075_v56  ;;  %1819 = vtanh.f32 %v768_v40  ;;  %v895_v55 = vadd.f32 1.0, %v1818_v45 }
 0x119   :  { %v579_v48 = vmul.f32 %v515_v42, %v2282_v37  ;;  %1821 = vtanh.f32 %v769_v0  ;;  %v958_v2 = vmul.f32 0.5, %v894_v53 }
 0x11a   :  { %v642_v49 = vmul.f32 0.044715, %v578_v60  ;;  %v959_v28 = vmul.f32 0.5, %v895_v55 }
 0x11b   :  { %v643_v50 = vmul.f32 0.044715, %v579_v48  ;;  %v353_v51 = vpop.f32.mrf.mxu0  ;;  %v1022_v38 = vmul.f32 %v958_v2, %v2244_v46 }
 0x11c   :  { %v706_v6 = vadd.f32 %v642_v49, %v2276_v15  ;;  %v2292_v24 = vadd.f32 %v353_v51, %v2086_v7  ;;  %v442_v54 = vpop.f32.mrf.mxu1  ;;  %v1023_v22 = vmul.f32 %v959_v28, %v2250_v52 }
 0x11d   :  { %v707_v14 = vadd.f32 %v643_v50, %v2282_v37  ;;  %v2296_v57 = vadd.f32 %v442_v54, %v2088_v8 }
 0x11e   :  { %v1820_v27 = vpop.eup %1819  ;;  %v516_v59 = vmul.f32 %v2292_v24, %v2292_v24  ;;  %v770_v61 = vmul.f32 0.7978846, %v706_v6 }
 0x11f   :  { %v1822_v62 = vpop.eup %1821  ;;  %v517_v63 = vmul.f32 %v2296_v57, %v2296_v57  ;;  %v896_v1 = vadd.f32 1.0, %v1820_v27  ;;  %v771_v21 = vmul.f32 0.7978846, %v707_v14 }
 0x120   :  { %v580_v3 = vmul.f32 %v516_v59, %v2292_v24  ;;  %v897_v4 = vadd.f32 1.0, %v1822_v62  ;;  %1823 = vtanh.f32 %v770_v61 }
 0x121   :  { %v581_v5 = vmul.f32 %v517_v63, %v2296_v57  ;;  %v960_v9 = vmul.f32 0.5, %v896_v1  ;;  %1825 = vtanh.f32 %v771_v21 }
 0x122   :  { %v644_v10 = vmul.f32 0.044715, %v580_v3  ;;  %v961_v12 = vmul.f32 0.5, %v897_v4 }
 0x123   :  { %v645_v16 = vmul.f32 0.044715, %v581_v5  ;;  %v356_v17 = vpop.f32.mrf.mxu0  ;;  %v1024_v18 = vmul.f32 %v960_v9, %v2260_v43 }
 0x124   :  { %v708_v19 = vadd.f32 %v644_v10, %v2292_v24  ;;  %v2308_v41 = vadd.f32 %v356_v17, %v2086_v7  ;;  %v445_v20 = vpop.f32.mrf.mxu1  ;;  %v1025_v23 = vmul.f32 %v961_v12, %v2264_v47 }
 0x125   :  { %v709_v25 = vadd.f32 %v645_v16, %v2296_v57  ;;  %v2314_v26 = vadd.f32 %v445_v20, %v2088_v8  ;;  %v1076_v29 = vpack.c.bf16 %v1024_v18, %v1022_v38 }
 0x126   :  { %v518_v46 = vmul.f32 %v2308_v41, %v2308_v41  ;;  %395 = vmatmul.bf16.gmra.mxu0 %v1732_v11  ;;  %v1077_v43 = vpack.c.bf16 %v1025_v23, %v1023_v22  ;;  %v772_v30 = vmul.f32 0.7978846, %v708_v19  ;;  %v1824_v31 = vpop.eup %1823 }
 0x127   :  { %v519_v13 = vmul.f32 %v2314_v26, %v2314_v26  ;;  %484 = vmatmul.bf16.gmra.mxu1 %v1732_v11  ;;  %1263 = vmatmul.bf16.gmra.mxu2 %v1076_v29  ;;  %v773_v52 = vmul.f32 0.7978846, %v709_v25  ;;  %v1826_v32 = vpop.eup %1825  ;;  %v898_v39 = vadd.f32 1.0, %v1824_v31 }
 0x128   :  { %v582_v47 = vmul.f32 %v518_v46, %v2308_v41  ;;  %1352 = vmatmul.bf16.gmra.mxu3 %v1077_v43  ;;  %1827 = vtanh.f32 %v772_v30  ;;  %v899_v42 = vadd.f32 1.0, %v1826_v32 }
 0x129   :  { %v583_v33 = vmul.f32 %v519_v13, %v2314_v26  ;;  %1829 = vtanh.f32 %v773_v52  ;;  %v962_v53 = vmul.f32 0.5, %v898_v39 }
 0x12a   :  { %v646_v34 = vmul.f32 0.044715, %v582_v47  ;;  %v963_v14 = vmul.f32 0.5, %v899_v42 }
 0x12b   :  { %v647_v35 = vmul.f32 0.044715, %v583_v33  ;;  %v358_v36 = vpop.f32.mrf.mxu0  ;;  %v1026_v2 = vmul.f32 %v962_v53, %v2276_v15 }
 0x12c   :  { %v710_v58 = vadd.f32 %v646_v34, %v2308_v41  ;;  %v2324_v56 = vadd.f32 %v358_v36, %v2086_v7  ;;  %v447_v40 = vpop.f32.mrf.mxu1  ;;  %v1027_v5 = vmul.f32 %v963_v14, %v2282_v37 }
 0x12d   :  { %v711_v0 = vadd.f32 %v647_v35, %v2314_v26  ;;  %v2328_v44 = vadd.f32 %v447_v40, %v2088_v8 }
 0x12e   :  { %v1828_v60 = vpop.eup %1827  ;;  %v520_v45 = vmul.f32 %v2324_v56, %v2324_v56  ;;  %v774_v48 = vmul.f32 0.7978846, %v710_v58 }
 0x12f   :  { %v1830_v49 = vpop.eup %1829  ;;  %v521_v50 = vmul.f32 %v2328_v44, %v2328_v44  ;;  %v900_v51 = vadd.f32 1.0, %v1828_v60  ;;  %v775_v6 = vmul.f32 0.7978846, %v711_v0 }
 0x130   :  { %v584_v54 = vmul.f32 %v520_v45, %v2324_v56  ;;  %v901_v55 = vadd.f32 1.0, %v1830_v49  ;;  %1831 = vtanh.f32 %v774_v48 }
 0x131   :  { %v585_v27 = vmul.f32 %v521_v50, %v2328_v44  ;;  %v964_v59 = vmul.f32 0.5, %v900_v51  ;;  %1833 = vtanh.f32 %v775_v6 }
 0x132   :  { %v648_v61 = vmul.f32 0.044715, %v584_v54  ;;  %v965_v62 = vmul.f32 0.5, %v901_v55 }
 0x133   :  { %v649_v63 = vmul.f32 0.044715, %v585_v27  ;;  %v361_v1 = vpop.f32.mrf.mxu0  ;;  %v1028_v21 = vmul.f32 %v964_v59, %v2292_v24 }
 0x134   :  { %v712_v3 = vadd.f32 %v648_v61, %v2324_v56  ;;  %v2340_v4 = vadd.f32 %v361_v1, %v2086_v7  ;;  %v450_v28 = vpop.f32.mrf.mxu1  ;;  %v1029_v9 = vmul.f32 %v965_v62, %v2296_v57 }
 0x135   :  { %v713_v10 = vadd.f32 %v649_v63, %v2328_v44  ;;  %v2346_v11 = vadd.f32 %v450_v28, %v2088_v8  ;;  %v1078_v12 = vpack.c.bf16 %v1028_v21, %v1026_v2 }
 0x136   :  { %v522_v15 = vmul.f32 %v2340_v4, %v2340_v4  ;;  %v1079_v24 = vpack.c.bf16 %v1029_v9, %v1027_v5  ;;  %v776_v16 = vmul.f32 0.7978846, %v712_v3  ;;  %v1832_v18 = vpop.eup %1831 }
 0x137   :  { %v523_v17 = vmul.f32 %v2346_v11, %v2346_v11  ;;  %1268 = vmatmul.bf16.gmra.mxu2 %v1078_v12  ;;  %v777_v38 = vmul.f32 0.7978846, %v713_v10  ;;  %v1834_v57 = vpop.eup %1833  ;;  %v902_v25 = vadd.f32 1.0, %v1832_v18 }
 0x138   :  { %v586_v37 = vmul.f32 %v522_v15, %v2340_v4  ;;  %1357 = vmatmul.bf16.gmra.mxu3 %v1079_v24  ;;  %1835 = vtanh.f32 %v776_v16  ;;  %v903_v30 = vadd.f32 1.0, %v1834_v57 }
 0x139   :  { %v587_v19 = vmul.f32 %v523_v17, %v2346_v11  ;;  %1837 = vtanh.f32 %v777_v38  ;;  %v966_v36 = vmul.f32 0.5, %v902_v25 }
 0x13a   :  { %v650_v20 = vmul.f32 0.044715, %v586_v37  ;;  %v967_v42 = vmul.f32 0.5, %v903_v30 }
 0x13b   :  { %v651_v22 = vmul.f32 0.044715, %v587_v19  ;;  %v363_v23 = vpop.f32.mrf.mxu0  ;;  %v1030_v51 = vmul.f32 %v966_v36, %v2308_v41 }
 0x13c   :  { %v714_v29 = vadd.f32 %v650_v20, %v2340_v4  ;;  %v2356_v46 = vadd.f32 %v363_v23, %v2086_v7  ;;  %v452_v43 = vpop.f32.mrf.mxu1  ;;  %v1031_v14 = vmul.f32 %v967_v42, %v2314_v26 }
 0x13d   :  { %v715_v13 = vadd.f32 %v651_v22, %v2346_v11  ;;  %v2360_v52 = vadd.f32 %v452_v43, %v2088_v8 }
 0x13e   :  { %v1836_v31 = vpop.eup %1835  ;;  %v524_v47 = vmul.f32 %v2356_v46, %v2356_v46  ;;  %v778_v32 = vmul.f32 0.7978846, %v714_v29 }
 0x13f   :  { %v1838_v33 = vpop.eup %1837  ;;  %v525_v34 = vmul.f32 %v2360_v52, %v2360_v52  ;;  %v904_v35 = vadd.f32 1.0, %v1836_v31  ;;  %v779_v39 = vmul.f32 0.7978846, %v715_v13 }
 0x140   :  { %v588_v58 = vmul.f32 %v524_v47, %v2356_v46  ;;  %v905_v40 = vadd.f32 1.0, %v1838_v33  ;;  %1839 = vtanh.f32 %v778_v32 }
 0x141   :  { %v589_v0 = vmul.f32 %v525_v34, %v2360_v52  ;;  %v968_v60 = vmul.f32 0.5, %v904_v35  ;;  %1841 = vtanh.f32 %v779_v39 }
 0x142   :  { %v652_v45 = vmul.f32 0.044715, %v588_v58  ;;  %v969_v48 = vmul.f32 0.5, %v905_v40 }
 0x143   :  { %v653_v49 = vmul.f32 0.044715, %v589_v0  ;;  %v366_v50 = vpop.f32.mrf.mxu0  ;;  %v1032_v53 = vmul.f32 %v968_v60, %v2324_v56 }
 0x144   :  { %v716_v6 = vadd.f32 %v652_v45, %v2356_v46  ;;  %v2372_v54 = vadd.f32 %v366_v50, %v2086_v7  ;;  %v455_v55 = vpop.f32.mrf.mxu1  ;;  %v1033_v27 = vmul.f32 %v969_v48, %v2328_v44 }
 0x145   :  { %v717_v59 = vadd.f32 %v653_v49, %v2360_v52  ;;  %v2378_v61 = vadd.f32 %v455_v55, %v2088_v8  ;;  %v1080_v62 = vpack.c.bf16 %v1032_v53, %v1030_v51 }
 0x146   :  { %v526_v41 = vmul.f32 %v2372_v54, %v2372_v54  ;;  %v1081_v56 = vpack.c.bf16 %v1033_v27, %v1031_v14  ;;  %v780_v63 = vmul.f32 0.7978846, %v716_v6  ;;  %v1840_v21 = vpop.eup %1839  ;;  %v82_v6 = vld [vmem:[#allocation2] sm:$0xff]  }
 0x147   :  { %v527_v1 = vmul.f32 %v2378_v61, %v2378_v61  ;;  %1273 = vmatmul.bf16.gmra.mxu2 %v1080_v62  ;;  %v781_v2 = vmul.f32 0.7978846, %v717_v59  ;;  %v1842_v44 = vpop.eup %1841  ;;  %v906_v10 = vadd.f32 1.0, %v1840_v21 }
 0x148   :  { %v590_v26 = vmul.f32 %v526_v41, %v2372_v54  ;;  %1362 = vmatmul.bf16.gmra.mxu3 %v1081_v56  ;;  %1843 = vtanh.f32 %v780_v63  ;;  %v907_v16 = vadd.f32 1.0, %v1842_v44 }
 0x149   :  { %v591_v3 = vmul.f32 %v527_v1, %v2378_v61  ;;  %1845 = vtanh.f32 %v781_v2  ;;  %v970_v23 = vmul.f32 0.5, %v906_v10  ;;  %v1408_v1 = vunpack.c.l.bf16 %v82_v6 }
 0x14a   :  { %v654_v28 = vmul.f32 0.044715, %v590_v26  ;;  %v971_v30 = vmul.f32 0.5, %v907_v16 }
 0x14b   :  { %v655_v5 = vmul.f32 0.044715, %v591_v3  ;;  %v368_v9 = vpop.f32.mrf.mxu0  ;;  %v1034_v35 = vmul.f32 %v970_v23, %v2340_v4 }
 0x14c   :  { %v718_v12 = vadd.f32 %v654_v28, %v2372_v54  ;;  %v2388_v15 = vadd.f32 %v368_v9, %v2086_v7  ;;  %v457_v24 = vpop.f32.mrf.mxu1  ;;  %v1035_v42 = vmul.f32 %v971_v30, %v2346_v11  ;;  %v2419_v11 = vld [vmem:[%s2648_s4] ss:$0 sm:$0xff] }
 0x14d   :  { %v719_v17 = vadd.f32 %v655_v5, %v2378_v61  ;;  %v2392_v38 = vadd.f32 %v457_v24, %v2088_v8 }
 0x14e   :  { %v1844_v18 = vpop.eup %1843  ;;  %v528_v37 = vmul.f32 %v2388_v15, %v2388_v15  ;;  %v782_v57 = vmul.f32 0.7978846, %v718_v12 }
 0x14f   :  { %v1846_v19 = vpop.eup %1845  ;;  %v529_v20 = vmul.f32 %v2392_v38, %v2392_v38  ;;  %v908_v22 = vadd.f32 1.0, %v1844_v18  ;;  %v783_v25 = vmul.f32 0.7978846, %v719_v17 }
 0x150   :  { %v592_v29 = vmul.f32 %v528_v37, %v2388_v15  ;;  %v909_v43 = vadd.f32 1.0, %v1846_v19  ;;  %1847 = vtanh.f32 %v782_v57 }
 0x151   :  { %v593_v13 = vmul.f32 %v529_v20, %v2392_v38  ;;  %v972_v31 = vmul.f32 0.5, %v908_v22  ;;  %1849 = vtanh.f32 %v783_v25 }
 0x152   :  { %v656_v47 = vmul.f32 0.044715, %v592_v29  ;;  %v973_v32 = vmul.f32 0.5, %v909_v43 }
 0x153   :  { %v657_v33 = vmul.f32 0.044715, %v593_v13  ;;  %v371_v34 = vpop.f32.mrf.mxu0  ;;  %v1036_v36 = vmul.f32 %v972_v31, %v2356_v46  ;;  %v1409_v13 = vunpack.c.h.bf16 %v82_v6  ;;  %v84_v6 = vld [vmem:[#allocation2 + $0x8] sm:$0xff]  }
 0x154   :  { %v720_v39 = vadd.f32 %v656_v47, %v2388_v15  ;;  %v2404_v58 = vadd.f32 %v371_v34, %v2086_v7  ;;  %v460_v40 = vpop.f32.mrf.mxu1  ;;  %v1037_v0 = vmul.f32 %v973_v32, %v2360_v52 }
 0x155   :  { %v721_v60 = vadd.f32 %v657_v33, %v2392_v38  ;;  %v2410_v45 = vadd.f32 %v460_v40, %v2088_v8  ;;  %v1082_v48 = vpack.c.bf16 %v1036_v36, %v1034_v35 }
 0x156   :  { %v530_v4 = vmul.f32 %v2404_v58, %v2404_v58  ;;  %v1083_v46 = vpack.c.bf16 %v1037_v0, %v1035_v42  ;;  %v784_v49 = vmul.f32 0.7978846, %v720_v39  ;;  %v1848_v50 = vpop.eup %1847 }
 0x157   :  { %v531_v51 = vmul.f32 %v2410_v45, %v2410_v45  ;;  %1278 = vmatmul.bf16.gmra.mxu2 %v1082_v48  ;;  %v785_v52 = vmul.f32 0.7978846, %v721_v60  ;;  %v1850_v55 = vpop.eup %1849  ;;  %v910_v62 = vadd.f32 1.0, %v1848_v50 }
 0x158   :  { %v594_v53 = vmul.f32 %v530_v4, %v2404_v58  ;;  %1367 = vmatmul.bf16.gmra.mxu3 %v1083_v46  ;;  %1851 = vtanh.f32 %v784_v49  ;;  %v911_v3 = vadd.f32 1.0, %v1850_v55 }
 0x159   :  { %v595_v14 = vmul.f32 %v531_v51, %v2410_v45  ;;  %1853 = vtanh.f32 %v785_v52  ;;  %v974_v24 = vmul.f32 0.5, %v910_v62 }
 0x15a   :  { %v658_v27 = vmul.f32 0.044715, %v594_v53  ;;  %v1239_v59 = vpop.f32.mrf.mxu2  ;;  %v975_v23 = vmul.f32 0.5, %v911_v3 }
 0x15b   :  { %v659_v41 = vmul.f32 0.044715, %v595_v14  ;;  %v1240_v56 = vadd.f32 %v2419_v11, %v1239_v59  ;;  %v1328_v63 = vpop.f32.mrf.mxu3  ;;  %v373_v2 = vpop.f32.mrf.mxu0  ;;  %v1038_v31 = vmul.f32 %v974_v24, %v2372_v54 }
 0x15c   :  { %v722_v21 = vadd.f32 %v658_v27, %v2404_v58  ;;  %v2426_v26 = vadd.f32 %v373_v2, %v2086_v7  ;;  %v462_v44 = vpop.f32.mrf.mxu1  ;;  %v1039_v0 = vmul.f32 %v975_v23, %v2378_v61 }
 0x15d   :  { %v723_v28 = vadd.f32 %v659_v41, %v2410_v45  ;;  %v1329_v5 = vadd.f32 %v1328_v63, %v1240_v56  ;;  %v2430_v9 = vadd.f32 %v462_v44, %v2088_v8 }
 0x15e   :  { %v1852_v10 = vpop.eup %1851  ;;  %v532_v12 = vmul.f32 %v2426_v26, %v2426_v26  ;;  %v786_v16 = vmul.f32 0.7978846, %v722_v21 }
 0x15f   :  { %v1854_v17 = vpop.eup %1853  ;;  %v1440_v18 = vadd.f32 %v1408_v1, %v1329_v5  ;;  %v533_v37 = vmul.f32 %v2430_v9, %v2430_v9  ;;  %v912_v57 = vadd.f32 1.0, %v1852_v10  ;;  %v787_v19 = vmul.f32 0.7978846, %v723_v28 }
 0x160   :  { %v596_v20 = vmul.f32 %v532_v12, %v2426_v26  ;;  %v913_v22 = vadd.f32 1.0, %v1854_v17  ;;  %1855 = vtanh.f32 %v786_v16  ;;  %v1410_v1 = vunpack.c.l.bf16 %v84_v6 }
 0x161   :  { %1472 = vst [vmem:[#allocation10] sm:$0xff] %v1440_v18  ;;  %v597_v25 = vmul.f32 %v533_v37, %v2430_v9  ;;  %v976_v29 = vmul.f32 0.5, %v912_v57  ;;  %1857 = vtanh.f32 %v787_v19 }
 0x162   :  { %v660_v43 = vmul.f32 0.044715, %v596_v20  ;;  %v1241_v30 = vpop.f32.mrf.mxu2  ;;  %v977_v47 = vmul.f32 0.5, %v913_v22 }
 0x163   :  { %v661_v32 = vmul.f32 0.044715, %v597_v25  ;;  %v1242_v33 = vadd.f32 %v2419_v11, %v1241_v30  ;;  %v1330_v34 = vpop.f32.mrf.mxu3  ;;  %v376_v35 = vpop.f32.mrf.mxu0  ;;  %v1040_v36 = vmul.f32 %v976_v29, %v2388_v15 }
 0x164   :  { %v724_v39 = vadd.f32 %v660_v43, %v2426_v26  ;;  %v2443_v40 = vadd.f32 %v376_v35, %v2086_v7  ;;  %v465_v42 = vpop.f32.mrf.mxu1  ;;  %v1041_v60 = vmul.f32 %v977_v47, %v2392_v38  ;;  %v1411_v47 = vunpack.c.h.bf16 %v84_v6  ;;  %v2490_v6 = vld [vmem:[#allocation2 + $0x10] sm:$0xff]  }
 0x165   :  { %v725_v54 = vadd.f32 %v661_v32, %v2430_v9  ;;  %v1331_v48 = vadd.f32 %v1330_v34, %v1242_v33  ;;  %v2449_v4 = vadd.f32 %v465_v42, %v2088_v8  ;;  %v1084_v46 = vpack.c.bf16 %v1040_v36, %v1038_v31 }
 0x166   :  { %v534_v15 = vmul.f32 %v2443_v40, %v2443_v40  ;;  %v1085_v49 = vpack.c.bf16 %v1041_v60, %v1039_v0  ;;  %v788_v50 = vmul.f32 0.7978846, %v724_v39  ;;  %v1856_v51 = vpop.eup %1855 }
 0x167   :  { %v1441_v52 = vadd.f32 %v1409_v13, %v1331_v48  ;;  %v535_v53 = vmul.f32 %v2449_v4, %v2449_v4  ;;  %1283 = vmatmul.bf16.gmra.mxu2 %v1084_v46  ;;  %v789_v61 = vmul.f32 0.7978846, %v725_v54  ;;  %v1858_v55 = vpop.eup %1857  ;;  %v914_v62 = vadd.f32 1.0, %v1856_v51 }
 0x168   :  { %v598_v38 = vmul.f32 %v534_v15, %v2443_v40  ;;  %1372 = vmatmul.bf16.gmra.mxu3 %v1085_v49  ;;  %1859 = vtanh.f32 %v788_v50  ;;  %v915_v28 = vadd.f32 1.0, %v1858_v55 }
 0x169   :  { %1473 = vst [vmem:[#allocation10 + $0x8] sm:$0xff] %v1441_v52  ;;  %v599_v14 = vmul.f32 %v535_v53, %v2449_v4  ;;  %1861 = vtanh.f32 %v789_v61  ;;  %v978_v17 = vmul.f32 0.5, %v914_v62 }
 0x16a   :  { %v662_v27 = vmul.f32 0.044715, %v598_v38  ;;  %v1244_v59 = vpop.f32.mrf.mxu2  ;;  %v979_v29 = vmul.f32 0.5, %v915_v28 }
 0x16b   :  { %v663_v41 = vmul.f32 0.044715, %v599_v14  ;;  %v1245_v56 = vadd.f32 %v2419_v11, %v1244_v59  ;;  %v1333_v63 = vpop.f32.mrf.mxu3  ;;  %v378_v2 = vpop.f32.mrf.mxu0  ;;  %v1042_v32 = vmul.f32 %v978_v17, %v2404_v58 }
 0x16c   :  { %v726_v21 = vadd.f32 %v662_v27, %v2443_v40  ;;  %v2460_v44 = vadd.f32 %v378_v2, %v2086_v7  ;;  %v467_v3 = vpop.f32.mrf.mxu1  ;;  %v1043_v48 = vmul.f32 %v979_v29, %v2410_v45 }
 0x16d   :  { %v727_v5 = vadd.f32 %v663_v41, %v2449_v4  ;;  %v1334_v10 = vadd.f32 %v1333_v63, %v1245_v56  ;;  %v2464_v12 = vadd.f32 %v467_v3, %v2088_v8 }
 0x16e   :  { %v1860_v24 = vpop.eup %1859  ;;  %v536_v16 = vmul.f32 %v2460_v44, %v2460_v44  ;;  %v790_v18 = vmul.f32 0.7978846, %v726_v21 }
 0x16f   :  { %v1862_v37 = vpop.eup %1861  ;;  %v1442_v57 = vadd.f32 %v1410_v1, %v1334_v10  ;;  %v537_v19 = vmul.f32 %v2464_v12, %v2464_v12  ;;  %v916_v20 = vadd.f32 1.0, %v1860_v24  ;;  %v791_v22 = vmul.f32 0.7978846, %v727_v5 }
 0x170   :  { %v600_v23 = vmul.f32 %v536_v16, %v2460_v44  ;;  %v917_v25 = vadd.f32 1.0, %v1862_v37  ;;  %1863 = vtanh.f32 %v790_v18  ;;  %v1412_v1 = vunpack.c.l.bf16 %v2490_v6 }
 0x171   :  { %1474 = vst [vmem:[#allocation10 + $0x10] sm:$0xff] %v1442_v57  ;;  %v601_v43 = vmul.f32 %v537_v19, %v2464_v12  ;;  %v980_v30 = vmul.f32 0.5, %v916_v20  ;;  %1865 = vtanh.f32 %v791_v22 }
 0x172   :  { %v664_v13 = vmul.f32 0.044715, %v600_v23  ;;  %v1246_v31 = vpop.f32.mrf.mxu2  ;;  %v981_v33 = vmul.f32 0.5, %v917_v25 }
 0x173   :  { %v665_v34 = vmul.f32 0.044715, %v601_v43  ;;  %v1247_v35 = vadd.f32 %v2419_v11, %v1246_v31  ;;  %v1335_v36 = vpop.f32.mrf.mxu3  ;;  %v381_v39 = vpop.f32.mrf.mxu0  ;;  %v1044_v42 = vmul.f32 %v980_v30, %v2426_v26 }
 0x174   :  { %v728_v0 = vadd.f32 %v664_v13, %v2460_v44  ;;  %v2477_v60 = vadd.f32 %v381_v39, %v2086_v7  ;;  %v470_v54 = vpop.f32.mrf.mxu1  ;;  %v1045_v46 = vmul.f32 %v981_v33, %v2430_v9  ;;  %v1413_v33 = vunpack.c.h.bf16 %v2490_v6  ;;  %v88_v6 = vld [vmem:[#allocation2 + $0x18] sm:$0xff]  }
 0x175   :  { %v729_v58 = vadd.f32 %v665_v34, %v2464_v12  ;;  %v1336_v15 = vadd.f32 %v1335_v36, %v1247_v35  ;;  %v2483_v49 = vadd.f32 %v470_v54, %v2088_v8  ;;  %v1086_v50 = vpack.c.bf16 %v1044_v42, %v1042_v32 }
 0x176   :  { %v538_v26 = vmul.f32 %v2477_v60, %v2477_v60  ;;  %v1087_v51 = vpack.c.bf16 %v1045_v46, %v1043_v48  ;;  %v792_v52 = vmul.f32 0.7978846, %v728_v0  ;;  %v1864_v53 = vpop.eup %1863 }
 0x177   :  { %v1443_v61 = vadd.f32 %v1411_v47, %v1336_v15  ;;  %v539_v38 = vmul.f32 %v2483_v49, %v2483_v49  ;;  %1288 = vmatmul.bf16.gmra.mxu2 %v1086_v50  ;;  %v793_v45 = vmul.f32 0.7978846, %v729_v58  ;;  %v1866_v55 = vpop.eup %1865  ;;  %v918_v62 = vadd.f32 1.0, %v1864_v53 }
 0x178   :  { %v602_v9 = vmul.f32 %v538_v26, %v2477_v60  ;;  %1377 = vmatmul.bf16.gmra.mxu3 %v1087_v51  ;;  %1867 = vtanh.f32 %v792_v52  ;;  %v919_v5 = vadd.f32 1.0, %v1866_v55 }
 0x179   :  { %1475 = vst [vmem:[#allocation10 + $0x18] sm:$0xff] %v1443_v61  ;;  %v603_v14 = vmul.f32 %v539_v38, %v2483_v49  ;;  %1869 = vtanh.f32 %v793_v45  ;;  %v982_v57 = vmul.f32 0.5, %v918_v62 }
 0x17a   :  { %v666_v27 = vmul.f32 0.044715, %v602_v9  ;;  %v1249_v59 = vpop.f32.mrf.mxu2  ;;  %v983_v30 = vmul.f32 0.5, %v919_v5 }
 0x17b   :  { %v667_v41 = vmul.f32 0.044715, %v603_v14  ;;  %v1250_v56 = vadd.f32 %v2419_v11, %v1249_v59  ;;  %v1338_v63 = vpop.f32.mrf.mxu3  ;;  %v383_v2 = vpop.f32.mrf.mxu0  ;;  %v1046_v34 = vmul.f32 %v982_v57, %v2443_v40 }
 0x17c   :  { %v730_v21 = vadd.f32 %v666_v27, %v2477_v60  ;;  %v2497_v3 = vadd.f32 %v383_v2, %v2086_v7  ;;  %v472_v28 = vpop.f32.mrf.mxu1  ;;  %v1047_v15 = vmul.f32 %v983_v30, %v2449_v4 }
 0x17d   :  { %v731_v10 = vadd.f32 %v667_v41, %v2483_v49  ;;  %v1339_v24 = vadd.f32 %v1338_v63, %v1250_v56  ;;  %v2501_v16 = vadd.f32 %v472_v28, %v2088_v8 }
 0x17e   :  { %v1868_v17 = vpop.eup %1867  ;;  %v794_v18 = vmul.f32 0.7978846, %v730_v21  ;;  %v540_v37 = vmul.f32 %v2497_v3, %v2497_v3 }
 0x17f   :  { %v1870_v19 = vpop.eup %1869  ;;  %v795_v20 = vmul.f32 0.7978846, %v731_v10  ;;  %v1444_v22 = vadd.f32 %v1412_v1, %v1339_v24  ;;  %v541_v23 = vmul.f32 %v2501_v16, %v2501_v16  ;;  %v920_v25 = vadd.f32 1.0, %v1868_v17 }
 0x180   :  { %v604_v29 = vmul.f32 %v540_v37, %v2497_v3  ;;  %v921_v43 = vadd.f32 1.0, %v1870_v19  ;;  %1871 = vtanh.f32 %v794_v18  ;;  %v1414_v1 = vunpack.c.l.bf16 %v88_v6 }
 0x181   :  { %1476 = vst [vmem:[#allocation10 + $0x20] sm:$0xff] %v1444_v22  ;;  %v605_v13 = vmul.f32 %v541_v23, %v2501_v16  ;;  %v984_v31 = vmul.f32 0.5, %v920_v25  ;;  %1873 = vtanh.f32 %v795_v20 }
 0x182   :  { %v668_v47 = vmul.f32 0.044715, %v604_v29  ;;  %v1251_v32 = vpop.f32.mrf.mxu2  ;;  %v985_v35 = vmul.f32 0.5, %v921_v43 }
 0x183   :  { %v669_v36 = vmul.f32 0.044715, %v605_v13  ;;  %v1252_v39 = vadd.f32 %v2419_v11, %v1251_v32  ;;  %v1340_v42 = vpop.f32.mrf.mxu3  ;;  %v386_v0 = vpop.f32.mrf.mxu0  ;;  %v1048_v54 = vmul.f32 %v984_v31, %v2460_v44 }
 0x184   :  { %v732_v48 = vadd.f32 %v668_v47, %v2497_v3  ;;  %v2515_v46 = vadd.f32 %v386_v0, %v2086_v7  ;;  %v475_v58 = vpop.f32.mrf.mxu1  ;;  %v1049_v50 = vmul.f32 %v985_v35, %v2464_v12  ;;  %v1415_v35 = vunpack.c.h.bf16 %v88_v6  ;;  %v90_v6 = vld [vmem:[#allocation2 + $0x20] sm:$0xff]  }
 0x185   :  { %v733_v40 = vadd.f32 %v669_v36, %v2501_v16  ;;  %v1341_v26 = vadd.f32 %v1340_v42, %v1252_v39  ;;  %v2521_v51 = vadd.f32 %v475_v58, %v2088_v8  ;;  %v1088_v52 = vpack.c.bf16 %v1048_v54, %v1046_v34 }
 0x186   :  { %v796_v53 = vmul.f32 0.7978846, %v732_v48  ;;  %v542_v44 = vmul.f32 %v2515_v46, %v2515_v46  ;;  %v1089_v61 = vpack.c.bf16 %v1049_v50, %v1047_v15  ;;  %v1872_v38 = vpop.eup %1871 }
 0x187   :  { %v797_v45 = vmul.f32 0.7978846, %v733_v40  ;;  %v1445_v9 = vadd.f32 %v1413_v33, %v1341_v26  ;;  %v543_v4 = vmul.f32 %v2521_v51, %v2521_v51  ;;  %1293 = vmatmul.bf16.gmra.mxu2 %v1088_v52  ;;  %v1874_v55 = vpop.eup %1873  ;;  %v922_v62 = vadd.f32 1.0, %v1872_v38 }
 0x188   :  { %1875 = vtanh.f32 %v796_v53  ;;  %v606_v12 = vmul.f32 %v542_v44, %v2515_v46  ;;  %1382 = vmatmul.bf16.gmra.mxu3 %v1089_v61  ;;  %v923_v10 = vadd.f32 1.0, %v1874_v55 }
 0x189   :  { %1877 = vtanh.f32 %v797_v45  ;;  %1477 = vst [vmem:[#allocation10 + $0x28] sm:$0xff] %v1445_v9  ;;  %v607_v14 = vmul.f32 %v543_v4, %v2521_v51  ;;  %v986_v20 = vmul.f32 0.5, %v922_v62 }
 0x18a   :  { %v670_v27 = vmul.f32 0.044715, %v606_v12  ;;  %v1254_v59 = vpop.f32.mrf.mxu2  ;;  %v987_v31 = vmul.f32 0.5, %v923_v10 }
 0x18b   :  { %v671_v41 = vmul.f32 0.044715, %v607_v14  ;;  %v1255_v56 = vadd.f32 %v2419_v11, %v1254_v59  ;;  %v1343_v63 = vpop.f32.mrf.mxu3  ;;  %v388_v2 = vpop.f32.mrf.mxu0  ;;  %v1050_v36 = vmul.f32 %v986_v20, %v2477_v60 }
 0x18c   :  { %v734_v21 = vadd.f32 %v670_v27, %v2515_v46  ;;  %v2532_v28 = vadd.f32 %v388_v2, %v2086_v7  ;;  %v477_v5 = vpop.f32.mrf.mxu1  ;;  %v1051_v26 = vmul.f32 %v987_v31, %v2483_v49 }
 0x18d   :  { %v735_v24 = vadd.f32 %v671_v41, %v2521_v51  ;;  %v1344_v17 = vadd.f32 %v1343_v63, %v1255_v56  ;;  %v2536_v18 = vadd.f32 %v477_v5, %v2088_v8 }
 0x18e   :  { %v1876_v37 = vpop.eup %1875  ;;  %v798_v57 = vmul.f32 0.7978846, %v734_v21  ;;  %v544_v19 = vmul.f32 %v2532_v28, %v2532_v28 }
 0x18f   :  { %v1878_v22 = vpop.eup %1877  ;;  %v799_v23 = vmul.f32 0.7978846, %v735_v24  ;;  %v1446_v25 = vadd.f32 %v1414_v1, %v1344_v17  ;;  %v545_v29 = vmul.f32 %v2536_v18, %v2536_v18  ;;  %v924_v43 = vadd.f32 1.0, %v1876_v37 }
 0x190   :  { %v608_v30 = vmul.f32 %v544_v19, %v2532_v28  ;;  %v925_v13 = vadd.f32 1.0, %v1878_v22  ;;  %1879 = vtanh.f32 %v798_v57  ;;  %v1416_v1 = vunpack.c.l.bf16 %v90_v6 }
 0x191   :  { %1478 = vst [vmem:[#allocation10 + $0x30] sm:$0xff] %v1446_v25  ;;  %v609_v47 = vmul.f32 %v545_v29, %v2536_v18  ;;  %v988_v32 = vmul.f32 0.5, %v924_v43  ;;  %1881 = vtanh.f32 %v799_v23 }
 0x192   :  { %v672_v33 = vmul.f32 0.044715, %v608_v30  ;;  %v1256_v34 = vpop.f32.mrf.mxu2  ;;  %v989_v39 = vmul.f32 0.5, %v925_v13 }
 0x193   :  { %v673_v42 = vmul.f32 0.044715, %v609_v47  ;;  %v1257_v0 = vadd.f32 %v2419_v11, %v1256_v34  ;;  %v1345_v54 = vpop.f32.mrf.mxu3  ;;  %v391_v48 = vpop.f32.mrf.mxu0  ;;  %v1052_v58 = vmul.f32 %v988_v32, %v2497_v3 }
 0x194   :  { %v736_v15 = vadd.f32 %v672_v33, %v2532_v28  ;;  %v2549_v50 = vadd.f32 %v391_v48, %v2086_v7  ;;  %v480_v40 = vpop.f32.mrf.mxu1  ;;  %v1053_v52 = vmul.f32 %v989_v39, %v2501_v16  ;;  %v1417_v39 = vunpack.c.h.bf16 %v90_v6  ;;  %v92_v6 = vld [vmem:[#allocation2 + $0x28] sm:$0xff]  }
 0x195   :  { %v737_v60 = vadd.f32 %v673_v42, %v2536_v18  ;;  %v1346_v53 = vadd.f32 %v1345_v54, %v1257_v0  ;;  %v2555_v44 = vadd.f32 %v480_v40, %v2088_v8  ;;  %v1090_v61 = vpack.c.bf16 %v1052_v58, %v1050_v36 }
 0x196   :  { %v800_v38 = vmul.f32 0.7978846, %v736_v15  ;;  %v546_v3 = vmul.f32 %v2549_v50, %v2549_v50  ;;  %v1091_v45 = vpack.c.bf16 %v1053_v52, %v1051_v26  ;;  %v1880_v9 = vpop.eup %1879 }
 0x197   :  { %v801_v4 = vmul.f32 0.7978846, %v737_v60  ;;  %v1447_v12 = vadd.f32 %v1415_v35, %v1346_v53  ;;  %v547_v49 = vmul.f32 %v2555_v44, %v2555_v44  ;;  %1298 = vmatmul.bf16.gmra.mxu2 %v1090_v61  ;;  %v1882_v55 = vpop.eup %1881  ;;  %v926_v62 = vadd.f32 1.0, %v1880_v9 }
 0x198   :  { %1883 = vtanh.f32 %v800_v38  ;;  %v610_v16 = vmul.f32 %v546_v3, %v2549_v50  ;;  %1387 = vmatmul.bf16.gmra.mxu3 %v1091_v45  ;;  %v927_v24 = vadd.f32 1.0, %v1882_v55 }
 0x199   :  { %1885 = vtanh.f32 %v801_v4  ;;  %1479 = vst [vmem:[#allocation10 + $0x38] sm:$0xff] %v1447_v12  ;;  %v611_v14 = vmul.f32 %v547_v49, %v2555_v44  ;;  %v990_v23 = vmul.f32 0.5, %v926_v62 }
 0x19a   :  { %v674_v27 = vmul.f32 0.044715, %v610_v16  ;;  %v1259_v59 = vpop.f32.mrf.mxu2  ;;  %v991_v32 = vmul.f32 0.5, %v927_v24 }
 0x19b   :  { %v675_v41 = vmul.f32 0.044715, %v611_v14  ;;  %v1260_v56 = vadd.f32 %v2419_v11, %v1259_v59  ;;  %v1348_v63 = vpop.f32.mrf.mxu3  ;;  %v393_v2 = vpop.f32.mrf.mxu0  ;;  %v1054_v42 = vmul.f32 %v990_v23, %v2515_v46 }
 0x19c   :  { %v738_v21 = vadd.f32 %v674_v27, %v2549_v50  ;;  %v2566_v5 = vadd.f32 %v393_v2, %v2086_v7  ;;  %v482_v10 = vpop.f32.mrf.mxu1  ;;  %v1055_v53 = vmul.f32 %v991_v32, %v2521_v51 }
 0x19d   :  { %v739_v17 = vadd.f32 %v675_v41, %v2555_v44  ;;  %v1349_v37 = vadd.f32 %v1348_v63, %v1260_v56  ;;  %v2570_v57 = vadd.f32 %v482_v10, %v2088_v8 }
 0x19e   :  { %v1884_v19 = vpop.eup %1883  ;;  %v802_v20 = vmul.f32 0.7978846, %v738_v21  ;;  %v548_v22 = vmul.f32 %v2566_v5, %v2566_v5 }
 0x19f   :  { %v1886_v25 = vpop.eup %1885  ;;  %v803_v29 = vmul.f32 0.7978846, %v739_v17  ;;  %v1448_v43 = vadd.f32 %v1416_v1, %v1349_v37  ;;  %v549_v30 = vmul.f32 %v2570_v57, %v2570_v57  ;;  %v928_v13 = vadd.f32 1.0, %v1884_v19 }
 0x1a0   :  { %v612_v31 = vmul.f32 %v548_v22, %v2566_v5  ;;  %v929_v47 = vadd.f32 1.0, %v1886_v25  ;;  %1887 = vtanh.f32 %v802_v20  ;;  %v1418_v1 = vunpack.c.l.bf16 %v92_v6 }
 0x1a1   :  { %1480 = vst [vmem:[#allocation10 + $0x40] sm:$0xff] %v1448_v43  ;;  %v613_v33 = vmul.f32 %v549_v30, %v2570_v57  ;;  %v992_v34 = vmul.f32 0.5, %v928_v13  ;;  %1889 = vtanh.f32 %v803_v29 }
 0x1a2   :  { %v676_v35 = vmul.f32 0.044715, %v612_v31  ;;  %v1261_v36 = vpop.f32.mrf.mxu2  ;;  %v993_v0 = vmul.f32 0.5, %v929_v47 }
 0x1a3   :  { %v677_v54 = vmul.f32 0.044715, %v613_v33  ;;  %v1262_v48 = vadd.f32 %v2419_v11, %v1261_v36  ;;  %v1350_v58 = vpop.f32.mrf.mxu3  ;;  %v396_v15 = vpop.f32.mrf.mxu0  ;;  %v1056_v40 = vmul.f32 %v992_v34, %v2532_v28  ;;  %v1419_v34 = vunpack.c.h.bf16 %v92_v6 }
 0x1a4   :  { %v740_v26 = vadd.f32 %v676_v35, %v2566_v5  ;;  %v2583_v52 = vadd.f32 %v396_v15, %v2086_v7  ;;  %v485_v60 = vpop.f32.mrf.mxu1  ;;  %v1057_v61 = vmul.f32 %v993_v0, %v2536_v18 }
 0x1a5   :  { %v741_v46 = vadd.f32 %v677_v54, %v2570_v57  ;;  %v1351_v38 = vadd.f32 %v1350_v58, %v1262_v48  ;;  %v2589_v3 = vadd.f32 %v485_v60, %v2088_v8  ;;  %v1092_v45 = vpack.c.bf16 %v1056_v40, %v1054_v42 }
 0x1a6   :  { %v804_v9 = vmul.f32 0.7978846, %v740_v26  ;;  %v550_v28 = vmul.f32 %v2583_v52, %v2583_v52  ;;  %v1093_v4 = vpack.c.bf16 %v1057_v61, %v1055_v53  ;;  %v1888_v12 = vpop.eup %1887 }
 0x1a7   :  { %v805_v49 = vmul.f32 0.7978846, %v741_v46  ;;  %v1449_v16 = vadd.f32 %v1417_v39, %v1351_v38  ;;  %v551_v51 = vmul.f32 %v2589_v3, %v2589_v3  ;;  %1303 = vmatmul.bf16.gmra.mxu2 %v1092_v45  ;;  %v1890_v55 = vpop.eup %1889  ;;  %v930_v62 = vadd.f32 1.0, %v1888_v12 }
 0x1a8   :  { %1891 = vtanh.f32 %v804_v9  ;;  %v614_v18 = vmul.f32 %v550_v28, %v2583_v52  ;;  %1392 = vmatmul.bf16.gmra.mxu3 %v1093_v4  ;;  %v931_v17 = vadd.f32 1.0, %v1890_v55  ;;  %v94_v4 = vld [vmem:[#allocation2 + $0x30] sm:$0xff]  }
 0x1a9   :  { %1893 = vtanh.f32 %v805_v49  ;;  %1481 = vst [vmem:[#allocation10 + $0x48] sm:$0xff] %v1449_v16  ;;  %v615_v14 = vmul.f32 %v551_v51, %v2589_v3  ;;  %v994_v29 = vmul.f32 0.5, %v930_v62  ;;  %v1420_v49 = vunpack.c.l.bf16 %v94_v4 }
 0x1aa   :  { %v678_v27 = vmul.f32 0.044715, %v614_v18  ;;  %v1264_v59 = vpop.f32.mrf.mxu2  ;;  %v995_v33 = vmul.f32 0.5, %v931_v17 }
 0x1ab   :  { %v679_v41 = vmul.f32 0.044715, %v615_v14  ;;  %v1265_v56 = vadd.f32 %v2419_v11, %v1264_v59  ;;  %v1353_v63 = vpop.f32.mrf.mxu3  ;;  %v398_v2 = vpop.f32.mrf.mxu0  ;;  %v1058_v42 = vmul.f32 %v994_v29, %v2549_v50 }
 0x1ac   :  { %v742_v21 = vadd.f32 %v678_v27, %v2583_v52  ;;  %v2600_v10 = vadd.f32 %v398_v2, %v2086_v7  ;;  %v487_v24 = vpop.f32.mrf.mxu1  ;;  %v1059_v26 = vmul.f32 %v995_v33, %v2555_v44 }
 0x1ad   :  { %v743_v37 = vadd.f32 %v679_v41, %v2589_v3  ;;  %v1354_v19 = vadd.f32 %v1353_v63, %v1265_v56  ;;  %v2604_v20 = vadd.f32 %v487_v24, %v2088_v8  ;;  %v1421_v24 = vunpack.c.h.bf16 %v94_v4 }
 0x1ae   :  { %v1892_v22 = vpop.eup %1891  ;;  %v806_v23 = vmul.f32 0.7978846, %v742_v21  ;;  %v552_v25 = vmul.f32 %v2600_v10, %v2600_v10 }
 0x1af   :  { %v1894_v43 = vpop.eup %1893  ;;  %v807_v30 = vmul.f32 0.7978846, %v743_v37  ;;  %v1450_v13 = vadd.f32 %v1418_v1, %v1354_v19  ;;  %v553_v7 = vmul.f32 %v2604_v20, %v2604_v20  ;;  %v932_v31 = vadd.f32 1.0, %v1892_v22 }
 0x1b0   :  { %v616_v47 = vmul.f32 %v552_v25, %v2600_v10  ;;  %v933_v32 = vadd.f32 1.0, %v1894_v43  ;;  %1895 = vtanh.f32 %v806_v23 }
 0x1b1   :  { %1482 = vst [vmem:[#allocation10 + $0x50] sm:$0xff] %v1450_v13  ;;  %v617_v8 = vmul.f32 %v553_v7, %v2604_v20  ;;  %v996_v35 = vmul.f32 0.5, %v932_v31  ;;  %1897 = vtanh.f32 %v807_v30  ;;  %v96_v30 = vld [vmem:[#allocation2 + $0x38] sm:$0xff]  }
 0x1b2   :  { %v680_v36 = vmul.f32 0.044715, %v616_v47  ;;  %v1266_v39 = vpop.f32.mrf.mxu2  ;;  %v997_v0 = vmul.f32 0.5, %v933_v32  ;;  %v1422_v47 = vunpack.c.l.bf16 %v96_v30  ;;  %v1423_v33 = vunpack.c.h.bf16 %v96_v30 }
 0x1b3   :  { %v681_v54 = vmul.f32 0.044715, %v617_v8  ;;  %v1267_v48 = vadd.f32 %v2419_v11, %v1266_v39  ;;  %v1355_v58 = vpop.f32.mrf.mxu3  ;;  %v1060_v15 = vmul.f32 %v996_v35, %v2566_v5  ;;  %v98_v35 = vld [vmem:[#allocation2 + $0x40] sm:$0xff]  }
 0x1b4   :  { %v744_v40 = vadd.f32 %v680_v36, %v2600_v10  ;;  %v1061_v60 = vmul.f32 %v997_v0, %v2570_v57  ;;  %v1424_v0 = vunpack.c.l.bf16 %v98_v35 }
 0x1b5   :  { %v745_v53 = vadd.f32 %v681_v54, %v2604_v20  ;;  %v1356_v61 = vadd.f32 %v1355_v58, %v1267_v48  ;;  %v1094_v46 = vpack.c.bf16 %v1060_v15, %v1058_v42 }
 0x1b6   :  { %v808_v38 = vmul.f32 0.7978846, %v744_v40  ;;  %v1095_v50 = vpack.c.bf16 %v1061_v60, %v1059_v26  ;;  %v1896_v28 = vpop.eup %1895  ;;  %v1425_v26 = vunpack.c.h.bf16 %v98_v35 }
 0x1b7   :  { %v809_v45 = vmul.f32 0.7978846, %v745_v53  ;;  %v1451_v9 = vadd.f32 %v1419_v34, %v1356_v61  ;;  %1308 = vmatmul.bf16.gmra.mxu2 %v1094_v46  ;;  %v1898_v5 = vpop.eup %1897  ;;  %v934_v16 = vadd.f32 1.0, %v1896_v28  ;;  %v100_v61 = vld [vmem:[#allocation2 + $0x48] sm:$0xff]  }
 0x1b8   :  { %1899 = vtanh.f32 %v808_v38  ;;  %1397 = vmatmul.bf16.gmra.mxu3 %v1095_v50  ;;  %v935_v51 = vadd.f32 1.0, %v1898_v5 }
 0x1b9   :  { %1901 = vtanh.f32 %v809_v45  ;;  %1483 = vst [vmem:[#allocation10 + $0x58] sm:$0xff] %v1451_v9  ;;  %v998_v59 = vmul.f32 0.5, %v934_v16  ;;  %v1426_v45 = vunpack.c.l.bf16 %v100_v61  ;;  %v102_v16 = vld [vmem:[#allocation2 + $0x50] sm:$0xff]  }
 0x1ba   :  { %v1269_v12 = vpop.f32.mrf.mxu2  ;;  %v999_v41 = vmul.f32 0.5, %v935_v51 }
 0x1bb   :  { %v1270_v44 = vadd.f32 %v2419_v11, %v1269_v12  ;;  %v1358_v57 = vpop.f32.mrf.mxu3  ;;  %v1062_v17 = vmul.f32 %v998_v59, %v2583_v52 }
 0x1bc   :  { %v1063_v19 = vmul.f32 %v999_v41, %v2589_v3 }
 0x1bd   :  { %v1359_v18 = vadd.f32 %v1358_v57, %v1270_v44  ;;  %v1427_v44 = vunpack.c.h.bf16 %v100_v61 }
 0x1be   :  { %v1900_v6 = vpop.eup %1899 }
 0x1bf   :  { %v1902_v55 = vpop.eup %1901  ;;  %v1452_v14 = vadd.f32 %v1420_v49, %v1359_v18  ;;  %v936_v27 = vadd.f32 1.0, %v1900_v6 }
 0x1c0   :  { %v937_v62 = vadd.f32 1.0, %v1902_v55  ;;  %v1428_v55 = vunpack.c.l.bf16 %v102_v16 }
 0x1c1   :  { %1484 = vst [vmem:[#allocation10 + $0x60] sm:$0xff] %v1452_v14  ;;  %v1000_v56 = vmul.f32 0.5, %v936_v27 }
 0x1c2   :  { %v1271_v63 = vpop.f32.mrf.mxu2  ;;  %v1001_v1 = vmul.f32 0.5, %v937_v62 }
 0x1c3   :  { %v1272_v2 = vadd.f32 %v2419_v11, %v1271_v63  ;;  %v1360_v21 = vpop.f32.mrf.mxu3  ;;  %v1064_v37 = vmul.f32 %v1000_v56, %v2600_v10  ;;  %v1429_v56 = vunpack.c.h.bf16 %v102_v16 }
 0x1c4   :  { %v1065_v22 = vmul.f32 %v1001_v1, %v2604_v20 }
 0x1c5   :  { %v1361_v23 = vadd.f32 %v1360_v21, %v1272_v2  ;;  %v1096_v25 = vpack.c.bf16 %v1064_v37, %v1062_v17  ;;  %v104_v2 = vld [vmem:[#allocation2 + $0x58] sm:$0xff]  }
 0x1c6   :  { %v1097_v29 = vpack.c.bf16 %v1065_v22, %v1063_v19  ;;  %v1430_v37 = vunpack.c.l.bf16 %v104_v2 }
 0x1c7   :  { %v1453_v43 = vadd.f32 %v1421_v24, %v1361_v23  ;;  %1313 = vmatmul.bf16.gmra.mxu2 %v1096_v25 }
 0x1c8   :  { %1402 = vmatmul.bf16.gmra.mxu3 %v1097_v29 }
 0x1c9   :  { %1485 = vst [vmem:[#allocation10 + $0x68] sm:$0xff] %v1453_v43  ;;  %v1431_v43 = vunpack.c.h.bf16 %v104_v2 }
 0x1ca   :  { %v1274_v13 = vpop.f32.mrf.mxu2 }
 0x1cb   :  { %v1275_v7 = vadd.f32 %v2419_v11, %v1274_v13  ;;  %v1363_v31 = vpop.f32.mrf.mxu3 }
 0x1cd   :  { %v1364_v52 = vadd.f32 %v1363_v31, %v1275_v7  ;;  %v106_v7 = vld [vmem:[#allocation2 + $0x60] sm:$0xff]  }
 0x1cf   :  { %v1454_v32 = vadd.f32 %v1422_v47, %v1364_v52  ;;  %v1903_v47 = vld [vmem:[%s2648_s4] ss:$0 sm:$0xff]  ;;  %s2040_s4 = smov [#allocation10]  }
 0x1d0   :  { %s1508_s17 = sshll.u32 %s2040_s4, 4  ;;  %s1509_s17 = int_to_ptr.vmem [resolvable:$true] %s1508_s17 }
 0x1d1   :  { %1486 = vst [vmem:[#allocation10 + $0x70] sm:$0xff] %v1454_v32 }
 0x1d2   :  { %v1276_v10 = vpop.f32.mrf.mxu2 }
 0x1d3   :  { %v1277_v3 = vadd.f32 %v2419_v11, %v1276_v10  ;;  %v1365_v20 = vpop.f32.mrf.mxu3  ;;  %v1432_v10 = vunpack.c.l.bf16 %v106_v7 }
 0x1d5   :  { %v1366_v8 = vadd.f32 %v1365_v20, %v1277_v3 }
 0x1d7   :  { %v1455_v34 = vadd.f32 %v1423_v33, %v1366_v8 }
 0x1d9   :  { %1487 = vst [vmem:[#allocation10 + $0x78] sm:$0xff] %v1455_v34  ;;  %v1433_v34 = vunpack.c.h.bf16 %v106_v7 }
 0x1da   :  { %v1279_v36 = vpop.f32.mrf.mxu2 }
 0x1db   :  { %v1280_v39 = vadd.f32 %v2419_v11, %v1279_v36  ;;  %v1368_v42 = vpop.f32.mrf.mxu3 }
 0x1dd   :  { %v1369_v54 = vadd.f32 %v1368_v42, %v1280_v39  ;;  %v108_v39 = vld [vmem:[#allocation2 + $0x68] sm:$0xff]  }
 0x1df   :  { %v1456_v48 = vadd.f32 %v1424_v0, %v1369_v54 }
 0x1e1   :  { %1488 = vst [vmem:[#allocation10 + $0x80] sm:$0xff] %v1456_v48  ;;  %v1434_v48 = vunpack.c.l.bf16 %v108_v39 }
 0x1e2   :  { %v1281_v58 = vpop.f32.mrf.mxu2 }
 0x1e3   :  { %v1282_v15 = vadd.f32 %v2419_v11, %v1281_v58  ;;  %v1370_v40 = vpop.f32.mrf.mxu3 }
 0x1e5   :  { %v1371_v60 = vadd.f32 %v1370_v40, %v1282_v15 }
 0x1e7   :  { %v1457_v53 = vadd.f32 %v1425_v26, %v1371_v60 }
 0x1e9   :  { %1489 = vst [vmem:[#allocation10 + $0x88] sm:$0xff] %v1457_v53  ;;  %v1435_v53 = vunpack.c.h.bf16 %v108_v39 }
 0x1ea   :  { %v1284_v46 = vpop.f32.mrf.mxu2 }
 0x1eb   :  { %v1285_v38 = vadd.f32 %v2419_v11, %v1284_v46  ;;  %v1373_v50 = vpop.f32.mrf.mxu3 }
 0x1ed   :  { %v1374_v9 = vadd.f32 %v1373_v50, %v1285_v38  ;;  %v110_v38 = vld [vmem:[#allocation2 + $0x70] sm:$0xff]  }
 0x1ef   :  { %v1458_v28 = vadd.f32 %v1426_v45, %v1374_v9 }
 0x1f1   :  { %1490 = vst [vmem:[#allocation10 + $0x90] sm:$0xff] %v1458_v28  ;;  %v1436_v28 = vunpack.c.l.bf16 %v110_v38 }
 0x1f2   :  { %v1286_v4 = vpop.f32.mrf.mxu2 }
 0x1f3   :  { %v1287_v5 = vadd.f32 %v2419_v11, %v1286_v4  ;;  %v1375_v12 = vpop.f32.mrf.mxu3 }
 0x1f5   :  { %v1376_v57 = vadd.f32 %v1375_v12, %v1287_v5 }
 0x1f7   :  { %v1459_v49 = vadd.f32 %v1427_v44, %v1376_v57 }
 0x1f9   :  { %1491 = vst [vmem:[#allocation10 + $0x98] sm:$0xff] %v1459_v49  ;;  %v1437_v49 = vunpack.c.h.bf16 %v110_v38 }
 0x1fa   :  { %v1289_v51 = vpop.f32.mrf.mxu2 }
 0x1fb   :  { %v1290_v18 = vadd.f32 %v2419_v11, %v1289_v51  ;;  %v1378_v6 = vpop.f32.mrf.mxu3 }
 0x1fd   :  { %v1379_v14 = vadd.f32 %v1378_v6, %v1290_v18  ;;  %v112_v18 = vld [vmem:[#allocation2 + $0x78] sm:$0xff]  }
 0x1ff   :  { %v1460_v27 = vadd.f32 %v1428_v55, %v1379_v14 }
 0x201   :  { %1492 = vst [vmem:[#allocation10 + $0xa0] sm:$0xff] %v1460_v27  ;;  %v1438_v27 = vunpack.c.l.bf16 %v112_v18 }
 0x202   :  { %v1291_v59 = vpop.f32.mrf.mxu2 }
 0x203   :  { %v1292_v62 = vadd.f32 %v2419_v11, %v1291_v59  ;;  %v1380_v41 = vpop.f32.mrf.mxu3 }
 0x205   :  { %v1381_v63 = vadd.f32 %v1380_v41, %v1292_v62 }
 0x207   :  { %v1461_v1 = vadd.f32 %v1429_v56, %v1381_v63  ;;  %v1439_v63 = vunpack.c.h.bf16 %v112_v18 }
 0x209   :  { %1493 = vst [vmem:[#allocation10 + $0xa8] sm:$0xff] %v1461_v1 }
 0x20a   :  { %v1294_v21 = vpop.f32.mrf.mxu2 }
 0x20b   :  { %v1295_v24 = vadd.f32 %v2419_v11, %v1294_v21  ;;  %v1383_v17 = vpop.f32.mrf.mxu3 }
 0x20d   :  { %v1384_v19 = vadd.f32 %v1383_v17, %v1295_v24 }
 0x20f   :  { %v1462_v22 = vadd.f32 %v1430_v37, %v1384_v19 }
 0x211   :  { %1494 = vst [vmem:[#allocation10 + $0xb0] sm:$0xff] %v1462_v22 }
 0x212   :  { %v1296_v23 = vpop.f32.mrf.mxu2 }
 0x213   :  { %v1297_v25 = vadd.f32 %v2419_v11, %v1296_v23  ;;  %v1385_v29 = vpop.f32.mrf.mxu3 }
 0x215   :  { %v1386_v30 = vadd.f32 %v1385_v29, %v1297_v25 }
 0x217   :  { %v1463_v13 = vadd.f32 %v1431_v43, %v1386_v30 }
 0x219   :  { %1495 = vst [vmem:[#allocation10 + $0xb8] sm:$0xff] %v1463_v13 }
 0x21a   :  { %v1299_v31 = vpop.f32.mrf.mxu2 }
 0x21b   :  { %v1300_v52 = vadd.f32 %v1903_v47, %v1299_v31  ;;  %v1388_v32 = vpop.f32.mrf.mxu3 }
 0x21d   :  { %v1389_v3 = vadd.f32 %v1388_v32, %v1300_v52 }
 0x21f   :  { %v1464_v20 = vadd.f32 %v1432_v10, %v1389_v3 }
 0x221   :  { %1496 = vst [vmem:[#allocation10 + $0xc0] sm:$0xff] %v1464_v20 }
 0x222   :  { %v1301_v33 = vpop.f32.mrf.mxu2 }
 0x223   :  { %v1302_v8 = vadd.f32 %v1903_v47, %v1301_v33  ;;  %v1390_v11 = vpop.f32.mrf.mxu3 }
 0x225   :  { %v1391_v35 = vadd.f32 %v1390_v11, %v1302_v8 }
 0x227   :  { %v1465_v36 = vadd.f32 %v1433_v34, %v1391_v35 }
 0x229   :  { %1497 = vst [vmem:[#allocation10 + $0xc8] sm:$0xff] %v1465_v36 }
 0x22a   :  { %v1304_v42 = vpop.f32.mrf.mxu2 }
 0x22b   :  { %v1305_v0 = vadd.f32 %v1903_v47, %v1304_v42  ;;  %v1393_v54 = vpop.f32.mrf.mxu3 }
 0x22d   :  { %v1394_v58 = vadd.f32 %v1393_v54, %v1305_v0 }
 0x22f   :  { %v1466_v15 = vadd.f32 %v1434_v48, %v1394_v58 }
 0x231   :  { %1498 = vst [vmem:[#allocation10 + $0xd0] sm:$0xff] %v1466_v15 }
 0x232   :  { %v1306_v40 = vpop.f32.mrf.mxu2 }
 0x233   :  { %v1307_v26 = vadd.f32 %v1903_v47, %v1306_v40  ;;  %v1395_v60 = vpop.f32.mrf.mxu3 }
 0x235   :  { %v1396_v61 = vadd.f32 %v1395_v60, %v1307_v26 }
 0x237   :  { %v1467_v46 = vadd.f32 %v1435_v53, %v1396_v61 }
 0x239   :  { %1499 = vst [vmem:[#allocation10 + $0xd8] sm:$0xff] %v1467_v46 }
 0x23a   :  { %v1309_v50 = vpop.f32.mrf.mxu2 }
 0x23b   :  { %v1310_v45 = vadd.f32 %v1903_v47, %v1309_v50  ;;  %v1398_v9 = vpop.f32.mrf.mxu3 }
 0x23d   :  { %v1399_v4 = vadd.f32 %v1398_v9, %v1310_v45 }
 0x23f   :  { %v1468_v5 = vadd.f32 %v1436_v28, %v1399_v4 }
 0x241   :  { %1500 = vst [vmem:[#allocation10 + $0xe0] sm:$0xff] %v1468_v5 }
 0x242   :  { %v1311_v12 = vpop.f32.mrf.mxu2 }
 0x243   :  { %v1312_v44 = vadd.f32 %v1903_v47, %v1311_v12  ;;  %v1400_v57 = vpop.f32.mrf.mxu3 }
 0x245   :  { %v1401_v16 = vadd.f32 %v1400_v57, %v1312_v44 }
 0x247   :  { %v1469_v51 = vadd.f32 %v1437_v49, %v1401_v16 }
 0x249   :  { %1501 = vst [vmem:[#allocation10 + $0xe8] sm:$0xff] %v1469_v51 }
 0x24a   :  { %v1314_v6 = vpop.f32.mrf.mxu2 }
 0x24b   :  { %v1315_v55 = vadd.f32 %v1903_v47, %v1314_v6  ;;  %v1403_v14 = vpop.f32.mrf.mxu3 }
 0x24d   :  { %v1404_v59 = vadd.f32 %v1403_v14, %v1315_v55 }
 0x24f   :  { %v1470_v62 = vadd.f32 %v1438_v27, %v1404_v59 }
 0x251   :  { %1502 = vst [vmem:[#allocation10 + $0xf0] sm:$0xff] %v1470_v62 }
 0x252   :  { %v1316_v41 = vpop.f32.mrf.mxu2 }
 0x253   :  { %v1317_v56 = vadd.f32 %v1903_v47, %v1316_v41  ;;  %v1405_v1 = vpop.f32.mrf.mxu3 }
 0x255   :  { %v1406_v2 = vadd.f32 %v1405_v1, %v1317_v56 }
 0x257   :  { %v1471_v21 = vadd.f32 %v1439_v63, %v1406_v2 }
 0x259   :  { %1503 = vst [vmem:[#allocation10 + $0xf8] sm:$0xff] %v1471_v21 }
 0x25a   :  { %1516 = dma.vmem_to_hbm [thread:$0]  %s1509_s17, 4096, %s1511_s20, [#allocation4], %s2033_s26, %s2033_s26, %s2034_s27  }
 0x25b   :  { %2030 = dma.done.wait [#allocation4], 4096  }
 0x25c   :  { %2031 = vsyncadd [#allocation4], 4294963200 }
 0x25d   :  { %1521 = vsyncpa [#allocation3], 1 }
 0x25e   :  { %1522 = vsyncpa [#allocation6], 1 }
 0x25f   :  { %1523 = vsyncpa [#allocation9], 1 }
 0x260   :  { %1524 = vsyncpa [#allocation4], 1 }

</bundles_post_ra>
